<compile_context>
chip_gen: v5e
topology: v5e:2x2
jax: 0.10.0
libtpu: 0.0.40
codegen_flags: <defaults>
</compile_context>

<pallas_src>
import functools

import jax
import jax.numpy as jnp
from jax.experimental import pallas as pl
from jax.experimental.pallas import tpu as pltpu


def _self_attention_2d_kernel(x_ref, w_ref, b_ref, gamma_ref, o_ref, *, bt, c, co):
    """Per-grid-step self-attention over `bt` batch elements.

    x_ref:     (bt, C, HW) f32 VMEM
    w_ref:     (C+2Co, C)  f32 VMEM   fused [wv; wq; wk]
    b_ref:     (C+2Co, 1)  f32 VMEM   fused [bv; bq; bk]
    gamma_ref: (1,)        f32 SMEM
    o_ref:     (bt, C, HW) f32 VMEM
    """
    gamma = gamma_ref[0]
    w = w_ref[...]       # resident across the whole grid (constant index_map)
    bias = b_ref[...]

    # Static unroll over the batch block: independent chains -> MXU/EUP overlap (ILP).
    for bi in range(bt):
        x = x_ref[bi]                                                   # (C, HW) f32

        # Fused 1x1-conv QKV projection: one MXU launch instead of three
        # sub-8-row launches.  HW stays in lanes throughout.
        qkv = jnp.dot(w, x, preferred_element_type=jnp.float32) + bias  # (C+2Co, HW)
        v = qkv[:c]                       # (C, HW)   rows 0..C-1 (tile aligned)
        q = qkv[c:c + co]                 # (Co, HW)
        k = qkv[c + co:c + 2 * co]        # (Co, HW)

        # scores[i, j] = sum_c k[c, i] * q[c, j]  ==  k^T @ q   (MXU, bf16 in / f32 acc)
        scores = jax.lax.dot_general(
            k.astype(jnp.bfloat16), q.astype(jnp.bfloat16),
            dimension_numbers=(((0,), (0,)), ((), ())),
            preferred_element_type=jnp.float32)                         # (HW, HW)

        # Row-wise softmax over the last (lane) dim, with the HW^2 divide replaced by
        # HW approximate EUP reciprocals folded (with gamma) into a row-scale of e.
        m = jnp.max(scores, axis=-1, keepdims=True)                     # (HW, 1)
        e = jnp.exp(scores - m)                                         # (HW, HW)
        l = jnp.sum(e, axis=-1, keepdims=True)                          # (HW, 1)
        scale = gamma * pl.reciprocal(l, approx=True)                   # (HW, 1)
        e_scaled = (e * scale).astype(jnp.bfloat16)                     # (HW, HW) bf16

        # out_v[c, j] = gamma * sum_i v[c, i] * attn[i, j]   (MXU, bf16 in / f32 acc)
        out_v = jnp.dot(v.astype(jnp.bfloat16), e_scaled,
                        preferred_element_type=jnp.float32)             # (C, HW)

        o_ref[bi] = out_v + x


def _pick_bt(batch):
    """Largest batch block <= 4 that keeps the grid >= 2 steps (v7x: 2 TensorCores)."""
    if batch <= 1:
        return 1
    best = 1
    for bt in (2, 3, 4):
        if batch % bt == 0 and batch // bt >= 2:
            best = bt
    return best


def self_attention_2d(x, wq, bq, wk, bk, wv, bv, gamma, *, bt=None):
    """x: (B, C, H, W); wq/wk: (Co, C); wv: (C, C); b*: (Co,)/(C,); gamma: scalar."""
    B, C, H, W = x.shape
    HW = H * W
    Co = wq.shape[0]
    Cq = C + 2 * Co
    if bt is None:
        bt = _pick_bt(B)
    assert B % bt == 0, (B, bt)

    # Glue: flatten spatial dims, fuse QKV weights/biases (v first: tile-aligned slice),
    # gamma as an SMEM scalar.
    x_flat = x.reshape(B, C, HW).astype(jnp.float32)
    w_qkv = jnp.concatenate(
        [wv.astype(jnp.float32), wq.astype(jnp.float32), wk.astype(jnp.float32)],
        axis=0)                                                    # (C+2Co, C)
    b_qkv = jnp.concatenate(
        [bv.astype(jnp.float32), bq.astype(jnp.float32), bk.astype(jnp.float32)],
        axis=0).reshape(Cq, 1)                                     # (C+2Co, 1)
    gamma1 = jnp.asarray(gamma, jnp.float32).reshape(1)

    flops = B * (2 * Cq * C * HW          # fused qkv projection
                 + 2 * Co * HW * HW       # k^T @ q
                 + 2 * C * HW * HW        # v @ e_scaled
                 + 5 * HW * HW            # softmax elementwise + reductions
                 + C * HW)                # residual add
    transcendentals = B * (HW * HW + HW)  # exp + per-row reciprocal
    bytes_accessed = 4 * (2 * B * C * HW + w_qkv.size + b_qkv.size + 1)

    kernel = functools.partial(_self_attention_2d_kernel, bt=bt, c=C, co=Co)

    out_flat = pl.pallas_call(
        kernel,
        out_shape=jax.ShapeDtypeStruct((B, C, HW), jnp.float32),
        grid=(B // bt,),
        in_specs=[
            pl.BlockSpec((bt, C, HW), lambda i: (i, 0, 0)),        # x  (per-step tile)
            pl.BlockSpec((Cq, C), lambda i: (0, 0)),               # fused W_qkv (resident)
            pl.BlockSpec((Cq, 1), lambda i: (0, 0)),               # fused b_qkv (resident)
            pl.BlockSpec((1,), lambda i: (0,),
                         memory_space=pltpu.MemorySpace.SMEM),     # gamma
        ],
        out_specs=pl.BlockSpec((bt, C, HW), lambda i: (i, 0, 0)),
        compiler_params=pltpu.CompilerParams(
            dimension_semantics=("parallel",)),
        cost_estimate=pl.CostEstimate(
            flops=int(flops), transcendentals=int(transcendentals),
            bytes_accessed=int(bytes_accessed)),
    )(x_flat, w_qkv, b_qkv, gamma1)

    return out_flat.reshape(B, C, H, W)


def _reference(x, wq, bq, wk, bk, wv, bv, gamma):
    """Pure-JAX f32 reference mirroring the PyTorch forward exactly."""
    B, C, H, W = x.shape
    HW = H * W
    xf = x.reshape(B, C, HW)
    q = jnp.einsum("oc,bcn->bon", wq, xf) + bq[None, :, None]
    k = jnp.einsum("oc,bcn->bon", wk, xf) + bk[None, :, None]
    v = jnp.einsum("oc,bcn->bon", wv, xf) + bv[None, :, None]
    scores = jnp.einsum("bci,bcj->bij", k, q)            # bmm(key^T, query)
    attn = jax.nn.softmax(scores, axis=-1)
    out_v = jnp.einsum("bcj,bji->bci", v, attn)          # bmm(value, attn)
    return (gamma * out_v + xf).reshape(B, C, H, W)


if __name__ == "__main__":
    # Small shapes consistent with the module: input_dims=32 -> output_dims=4.
    B, C, H, W = 2, 32, 16, 16
    Co = C // 8

    key = jax.random.PRNGKey(0)
    ks = jax.random.split(key, 7)
    x = jax.random.normal(ks[0], (B, C, H, W), dtype=jnp.float32)
    scale = 1.0 / float(C) ** 0.5                        # ~Conv2d default init scale
    wq = jax.random.normal(ks[1], (Co, C), jnp.float32) * scale
    bq = jax.random.normal(ks[2], (Co,), jnp.float32) * 0.1
    wk = jax.random.normal(ks[3], (Co, C), jnp.float32) * scale
    bk = jax.random.normal(ks[4], (Co,), jnp.float32) * 0.1
    wv = jax.random.normal(ks[5], (C, C), jnp.float32) * scale
    bv = jax.random.normal(ks[6], (C,), jnp.float32) * 0.1
    gamma = 0.5   # module initializes gamma=0; nonzero exercises the attention path

    out = self_attention_2d(x, wq, bq, wk, bk, wv, bv, gamma)
    out = jax.block_until_ready(out)

    expected = _reference(x, wq, bq, wk, bk, wv, bv, jnp.float32(gamma))
    assert out.shape == (B, C, H, W), out.shape
    max_err = float(jnp.max(jnp.abs(out - expected)))
    # bf16 MXU operands + approximate reciprocal => loosened tolerance vs the
    # exact-f32 reference (review's correctness note).
    assert jnp.allclose(out, expected, atol=5e-2, rtol=5e-2), max_err

    print("KERNEL_OK")
</pallas_src>

<mosaic_0001>
module attributes {stable_mosaic.version = 11 : i64} {
  func.func @_self_attention_2d_kernel(%arg0: i32, %arg1: memref<1x32x256xf32, #tpu.memory_space<vmem>>, %arg2: memref<40x32xf32, #tpu.memory_space<vmem>>, %arg3: memref<40x1xf32, #tpu.memory_space<vmem>>, %arg4: memref<1xf32, #tpu.memory_space<smem>>, %arg5: memref<1x32x256xf32, #tpu.memory_space<vmem>>) attributes {dimension_semantics = [#tpu.dimension_semantics<parallel>], iteration_bounds = array<i64: 2>, scalar_prefetch = 0 : i64, scratch_operands = 0 : i64, tpu.core_type = #tpu.core_type<tc>, window_params = [{transform_indices = @transform_0, window_bounds = array<i64: 1, 32, 256>}, {pipeline_mode = #tpu.pipeline_mode<synchronous>, transform_indices = @transform_1, window_bounds = array<i64: 40, 32>}, {pipeline_mode = #tpu.pipeline_mode<synchronous>, transform_indices = @transform_2, window_bounds = array<i64: 40, 1>}, {transform_indices = @transform_3, window_bounds = array<i64: 1>}, {transform_indices = @transform_4, window_bounds = array<i64: 1, 32, 256>}]} {
    %c0 = arith.constant 0 : index
    %0 = memref.load %arg4[%c0] : memref<1xf32, #tpu.memory_space<smem>>
    %c0_0 = arith.constant 0 : index
    %c0_1 = arith.constant 0 : index
    %1 = vector.load %arg2[%c0_0, %c0_1] : memref<40x32xf32, #tpu.memory_space<vmem>>, vector<40x32xf32>
    %c0_2 = arith.constant 0 : index
    %c0_3 = arith.constant 0 : index
    %2 = vector.load %arg3[%c0_2, %c0_3] : memref<40x1xf32, #tpu.memory_space<vmem>>, vector<40x1xf32>
    %c0_4 = arith.constant 0 : index
    %c0_5 = arith.constant 0 : index
    %c0_6 = arith.constant 0 : index
    %3 = vector.load %arg1[%c0_4, %c0_5, %c0_6] : memref<1x32x256xf32, #tpu.memory_space<vmem>>, vector<1x32x256xf32>
    %4 = vector.shape_cast %3 : vector<1x32x256xf32> to vector<32x256xf32>
    %cst = arith.constant dense<0.000000e+00> : vector<40x256xf32>
    %5 = tpu.matmul %1, %4, %cst {dimension_numbers = #tpu.dot_dimension_numbers<[1], [0], [0], [1], [0, 0, 1, 1], [], []>} : vector<40x32xf32>, vector<32x256xf32>, vector<40x256xf32> -> vector<40x256xf32>
    %6 = vector.broadcast %2 : vector<40x1xf32> to vector<40x256xf32>
    %7 = arith.addf %5, %6 : vector<40x256xf32>
    %8 = vector.extract_strided_slice %7 {offsets = [0, 0], sizes = [32, 256], strides = [1, 1]} : vector<40x256xf32> to vector<32x256xf32>
    %9 = vector.extract_strided_slice %7 {offsets = [32, 0], sizes = [4, 256], strides = [1, 1]} : vector<40x256xf32> to vector<4x256xf32>
    %10 = vector.extract_strided_slice %7 {offsets = [36, 0], sizes = [4, 256], strides = [1, 1]} : vector<40x256xf32> to vector<4x256xf32>
    %11 = arith.truncf %10 : vector<4x256xf32> to vector<4x256xbf16>
    %12 = arith.truncf %9 : vector<4x256xf32> to vector<4x256xbf16>
    %cst_7 = arith.constant dense<0.000000e+00> : vector<256x256xf32>
    %13 = tpu.matmul %11, %12, %cst_7 {dimension_numbers = #tpu.dot_dimension_numbers<[0], [0], [1], [1], [0, 1, 1, 1], [], []>} : vector<4x256xbf16>, vector<4x256xbf16>, vector<256x256xf32> -> vector<256x256xf32>
    %cst_8 = arith.constant dense<0xFF800000> : vector<256xf32>
    %14 = vector.multi_reduction <maximumf>, %13, %cst_8 [1] : vector<256x256xf32> to vector<256xf32>
    %15 = vector.shape_cast %14 : vector<256xf32> to vector<256x1xf32>
    %16 = vector.broadcast %15 : vector<256x1xf32> to vector<256x256xf32>
    %17 = arith.subf %13, %16 : vector<256x256xf32>
    %18 = math.exp %17 : vector<256x256xf32>
    %cst_9 = arith.constant dense<0.000000e+00> : vector<256xf32>
    %19 = vector.multi_reduction <add>, %18, %cst_9 [1] : vector<256x256xf32> to vector<256xf32>
    %20 = vector.shape_cast %19 : vector<256xf32> to vector<256x1xf32>
    %21 = tpu.reciprocal %20 {approx = true} : vector<256x1xf32> -> vector<256x1xf32>
    %22 = vector.broadcast %0 : f32 to vector<256x1xf32>
    %23 = arith.mulf %22, %21 : vector<256x1xf32>
    %24 = vector.broadcast %23 : vector<256x1xf32> to vector<256x256xf32>
    %25 = arith.mulf %18, %24 : vector<256x256xf32>
    %26 = arith.truncf %25 : vector<256x256xf32> to vector<256x256xbf16>
    %27 = arith.truncf %8 : vector<32x256xf32> to vector<32x256xbf16>
    %cst_10 = arith.constant dense<0.000000e+00> : vector<32x256xf32>
    %28 = tpu.matmul %27, %26, %cst_10 {dimension_numbers = #tpu.dot_dimension_numbers<[1], [0], [0], [1], [0, 0, 1, 1], [], []>} : vector<32x256xbf16>, vector<256x256xbf16>, vector<32x256xf32> -> vector<32x256xf32>
    %29 = arith.addf %28, %4 : vector<32x256xf32>
    %c0_11 = arith.constant 0 : index
    %c0_12 = arith.constant 0 : index
    %c0_13 = arith.constant 0 : index
    %30 = vector.load %arg5[%c0_11, %c0_12, %c0_13] : memref<1x32x256xf32, #tpu.memory_space<vmem>>, vector<1x32x256xf32>
    %31 = vector.shape_cast %30 : vector<1x32x256xf32> to vector<32x256xf32>
    %32 = vector.shape_cast %29 : vector<32x256xf32> to vector<1x32x256xf32>
    tpu.vector_store %arg5[%c0_11, %c0_12, %c0_13], %32 {strides = array<i32>} : memref<1x32x256xf32, #tpu.memory_space<vmem>>, vector<1x32x256xf32>,
    return
  }
  func.func @transform_0(%arg0: i32) -> (i32, i32, i32) {
    %c0_i32 = arith.constant 0 : i32
    %c0_i32_0 = arith.constant 0 : i32
    %c0_i32_1 = arith.constant 0 : i32
    return %arg0, %c0_i32, %c0_i32_0 : i32, i32, i32
  }
  func.func @transform_1(%arg0: i32) -> (i32, i32) {
    %c0_i32 = arith.constant 0 : i32
    %c0_i32_0 = arith.constant 0 : i32
    %c0_i32_1 = arith.constant 0 : i32
    return %c0_i32, %c0_i32_0 : i32, i32
  }
  func.func @transform_2(%arg0: i32) -> (i32, i32) {
    %c0_i32 = arith.constant 0 : i32
    %c0_i32_0 = arith.constant 0 : i32
    %c0_i32_1 = arith.constant 0 : i32
    return %c0_i32, %c0_i32_0 : i32, i32
  }
  func.func @transform_3(%arg0: i32) -> i32 {
    %c0_i32 = arith.constant 0 : i32
    %c0_i32_0 = arith.constant 0 : i32
    return %c0_i32 : i32
  }
  func.func @transform_4(%arg0: i32) -> (i32, i32, i32) {
    %c0_i32 = arith.constant 0 : i32
    %c0_i32_0 = arith.constant 0 : i32
    %c0_i32_1 = arith.constant 0 : i32
    return %arg0, %c0_i32, %c0_i32_0 : i32, i32, i32
  }
}

</mosaic_0001>

<bundles_post_ra>
// kernel: tpu_custom_call.1
= control target key start
LH: loop header
LB: loop body
LE: loop exit
PB: predicated region body
PF: predicated region fallthrough
CT: control target
= control target key end

     0   :  { %s2732_s0 = inlined_call_operand.hbm [shape: f32[2,32,256], index: 0, kind: input, shape index: {}]   ;;  %s2733_s1 = inlined_call_operand.vmem [shape: f32[40,32], index: 1, kind: input, shape index: {}]   ;;  %s2734_s2 = inlined_call_operand.vmem [shape: f32[40,1], index: 2, kind: input, shape index: {}]   ;;  %s2735_s3 = inlined_call_operand.<no memory space> [shape: f32[1], index: 3, kind: input, shape index: {}]   ;;  %s2736_s4 = inlined_call_operand.hbm [shape: f32[2,32,256], index: 4, kind: output, shape index: {}]  }
   0x1   :  { %9 = sst [smem:[#allocation2]] %s2735_s3 }
   0x2   :  { %10 = vsyncpa [#allocation4], 0 }
   0x3   :  { %12 = vsyncpa [#allocation4 + $0x1], 0 }
   0x4   :  { %13 = vsyncpa [#allocation5], 0 }
   0x5   :  { %15 = vsyncpa [#allocation5 + $0x1], 0  ;;  %s1777_s17 = smov 0   ;;  %s1779_s18 = smov 0  }
   0x6   :  { %s1781_s19 = smov 0   ;;  %s1783_s20 = smov 0  }
   0x7 LB: > { %s1798_s3 = sadd.s32 4294967295, %s1742_s20   ;;  %s1332_s21 = sadd.s32 4294967294, %s1742_s20   ;;  %s1742_s20 = sphi %s1783_s20, %s2830_s20   ;;  %s1738_s19 = sphi %s1781_s19, %s2829_s19   ;;  %s1734_s18 = sphi %s1779_s18, %s2828_s18   ;;  %s1730_s17 = sphi %s1777_s17, %s2827_s17  }
   0x8   : > { %s1802_s22 = sadd.s32 1, %s1742_s20   ;;  %s28_s23 = sadd.s32 1, %s1738_s19 }
   0x9   : > { %s25_s24 = ssub.s32 %s1742_s20, %s1802_s22  ;;  %p35_p0 = scmp.ne.s32.totalorder %s1738_s19, %s1734_s18 }
   0xa   : > { %p26_p1 = scmp.eq.s32.totalorder %s25_s24, 0  ;;  %p36_p2 = scmp.eq.s32.totalorder %s1742_s20, 0 }
   0xb   : > { %p41_p3 = scmp.ne.s32.totalorder %s1734_s18, %s1730_s17  ;;  %p42_p4 = scmp.eq.s32.totalorder %s1798_s3, 0 }
   0xc   : > { %s1814_s25 = scalar_select %p26_p1, %s1738_s19, %s28_s23  }
   0xd   : > { %p1816_p5 = por %p36_p2, %p35_p0  ;;  %p1820_p6 = por %p42_p4, %p41_p3 }
   0xe   : > { %p128_p7 = scmp.eq.s32.totalorder %s1798_s3, 1  ;;  %p134_p8 = scmp.eq.s32.totalorder %s1332_s21, 1 }
   0xf   : > { %p1404_p10 = scmp.lt.s32.totalorder %s1742_s20, 2  ;;  %s163_s30 = sand.u32 1, %s1738_s19  }
  0x10   : > { %p1827_p11 = por %p128_p7, %p35_p0  ;;  %p1831_p12 = por %p134_p8, %p41_p3 }
  0x11   : > { %s1388_s5 = sshll.u32 %s1742_s20, 6  ;;  %s1335_s6 = sshll.u32 %s163_s30, 6 }
  0x12   : > { %s172_s9 = scalar_lea.hbm %s2732_s0, %s1388_s5  ;;  %s167_s11 = scalar_lea.vmem [#allocation3], %s1335_s6 }
  0x13   : > { %s173_s10 = sshll.u32 %s172_s9, 4  ;;  %s175_s12 = sshll.u32 %s167_s11, 4  ;;  %s174_s10 = int_to_ptr.hbm [resolvable:$true] %s173_s10  ;;  %s176_s12 = int_to_ptr.vmem [resolvable:$true] %s175_s12 }
  0x14   : > { %p1842_p13 = pnand %p1404_p10, %p1816_p5  ;;  %p1338_p0 = scmp.ge.s32.totalorder %s1742_s20, 1 }
  0x15   : > { %p183_p1 = scmp.lt.s32.totalorder %s1742_s20, 3  ;;  %s164_s14 = scalar_lea.sflag [#allocation4], %s163_s30 }
  0x16   : > { %s1646_s15 = sshra.s32 %s174_s10, 4  ;;  %p1650_p3 = pneg %p1842_p13  ;;  %s1647_s15 = int_to_ptr.hbm [resolvable:$true] %s1646_s15 }
  0x17   : > { %s1648_s16 = scalar_lea.hbm %s1647_s15, 64  ;;  %s1653_s24 = scalar_lea.hbm %s2732_s0, 128 }
  0x18   : > { %p1649_p2 = scmp.ne.s32.totalorder %s1647_s15, %s1648_s16  ;;  %p1654_p5 = scmp.lt.s32.totalorder %s1647_s15, %s2732_s0 }
  0x19   : > { %p1655_p8 = scmp.lt.s32.totalorder %s1653_s24, %s1648_s16 }
  0x1a   : > { %p1651_p4 = pnand %p1650_p3, %p1649_p2 }
  0x1b   : > { %p1656_p10 = por %p1655_p8, %p1654_p5 }
  0x1c   : > { %p1652_p7 = pneg %p1651_p4 }
  0x1e   : > { %p1657_p9 = pnand %p1656_p10, %p1652_p7 }
  0x20   : > { %1660 = shalt.err (!%p1657_p9)
}
  0x21   : > { %s1744_s30 = smov 256   ;;  %s1745_s6 = smov 16  }
  0x22   : > { %1399 = dma.hbm_to_vmem [thread:$0]  (!%p1842_p13), %s174_s10, 1024, %s176_s12, %s164_s14, %s1744_s30, %s1744_s30, %s1745_s6  }
  0x23   : > { %p184_p2 = pnand %p1338_p0, %p183_p1 }
  0x25   : > { %187 = sbr.rel (%p184_p2) target bundleno = 1328 (0x530), region = 36 }
  0x2a   : > { %s1863_s7 = sand.u32 1, %s1734_s18  }
  0x2b   : > { %s1339_s8 = sshll.u32 %s1863_s7, 6  ;;  %s190_s9 = scalar_lea.sflag [#allocation4], %s1863_s7 }
  0x2c   : > { %s1869_s11 = scalar_lea.vmem [#allocation3], %s1339_s8 }
  0x2d   : > { %1721 = dma.done.wait (%p1820_p6), %s190_s9, 1024  }
  0x2e   : > { %1723 = vsyncadd (%p1820_p6), %s190_s9, 4294966272  ;;  %v237_v0 = vld [vmem:[%s1869_s11 + $0x30] sm:$0xff]  ;;  %v238_v1 = vld [vmem:[%s1869_s11 + $0x38] sm:$0xff]  ;;  %vm264_vm0 = vcmask 261120   ;;  %v1746_v10 = vmov 0   ;;  %vm425_vm1 = vcmask 1041408  }
  0x2f   : > { %v235_v2 = vld [vmem:[%s1869_s11 + $0x20] sm:$0xff]  ;;  %292 = vmatpush.msra.mxu0 %v237_v0  ;;  %324 = vmatpush.msra.mxu1 %v238_v1  ;;  %v236_v3 = vld [vmem:[%s1869_s11 + $0x28] sm:$0xff]  ;;  %v233_v4 = vld [vmem:[%s1869_s11 + $0x10] sm:$0xff]  ;;  %vm376_vm2 = vcmask 31744   ;;  %s220_s9 = sld [smem:[#allocation2]]  ;;  %s2681_s16 = scalar_lea.vmem [#allocation6], %s1339_s8 }
  0x30   : > { %v234_v5 = vld [vmem:[%s1869_s11 + $0x18] sm:$0xff]  ;;  %v231_v6 = vld [vmem:[%s1869_s11] sm:$0xff]  ;;  %v232_v7 = vld [vmem:[%s1869_s11 + $0x8] sm:$0xff]  ;;  %1443 = vset.pattern.permute.xlu0 %v1746_v10  ;;  %1444 = vset.pattern.permute.xlu2 %v1746_v10  ;;  %s1389_s8 = sshll.u32 %s1798_s3, 6  ;;  %s1256_s26 = sshll.u32 %s2681_s16, 4  ;;  %s1257_s26 = int_to_ptr.vmem [resolvable:$true] %s1256_s26 }
  0x31   : > { %293 = vmatpush.msra.mxu0 %v235_v2  ;;  %325 = vmatpush.msra.mxu1 %v236_v3  ;;  %v221_v8 = vld [vmem:[%s2733_s1] sm:$0xff]  ;;  %v222_v11 = vld [vmem:[%s2733_s1 + $0x8] sm:$0xff]  ;;  %v223_v12 = vld [vmem:[%s2733_s1 + $0x10] sm:$0xff]  ;;  %s1255_s24 = scalar_lea.hbm %s2736_s4, %s1389_s8  ;;  %s1244_s30 = scalar_lea.sflag [#allocation5], %s1863_s7 }
  0x32   : > { %v230_v9 = vld [vmem:[%s2734_s2 + $0x20] sm:$0xff]  ;;  %1445 = vset.pattern.permute.xlu1 %v1746_v10  ;;  %v224_v13 = vld [vmem:[%s2733_s1 + $0x18] sm:$0xff]  ;;  %s1258_s5 = sshll.u32 %s1255_s24, 4  ;;  %s1696_s10 = scalar_lea.hbm %s2736_s4, 128  ;;  %s1259_s5 = int_to_ptr.hbm [resolvable:$true] %s1258_s5 }
  0x33   : > { %294 = vmatpush.msra.mxu0 %v233_v4  ;;  %326 = vmatpush.msra.mxu1 %v234_v5  ;;  %v225_v14 = vld [vmem:[%s2733_s1 + $0x20] sm:$0xff]  ;;  %s1690_s6 = sshra.s32 %s1259_s5, 4  ;;  %s1691_s6 = int_to_ptr.hbm [resolvable:$true] %s1690_s6 }
  0x34   : > { %261 = vperm.xlu0 %1443, %v230_v9   ;;  %s1692_s3 = scalar_lea.hbm %s1691_s6, 64  ;;  %p1697_p0 = scmp.lt.s32.totalorder %s1691_s6, %s2736_s4 }
  0x35   : > { %295 = vmatpush.msra.mxu0 %v231_v6  ;;  %327 = vmatpush.msra.mxu1 %v232_v7  ;;  %p1693_p6 = scmp.ne.s32.totalorder %s1691_s6, %s1692_s3  ;;  %p1698_p1 = scmp.lt.s32.totalorder %s1696_s10, %s1692_s3 }
  0x36   : > { %1341 = vmatmul.msk.f32.vlgmr.msra.gmra.mxu0 %vm264_vm0, %v221_v8  ;;  %1346 = vmatmul.msk.f32.vlgmr.msra.gmra.mxu1 %vm264_vm0, %v221_v8 }
  0x37   : > { %p1694_p9 = pnand %p1693_p6, %p1827_p11  ;;  %p1699_p3 = por %p1698_p1, %p1697_p0 }
  0x39   : > { %p1695_p13 = pneg %p1694_p9 }
  0x3b   : > { %p1700_p4 = pnand %p1699_p3, %p1695_p13 }
  0x3e   : > { %1342 = vmatmul.msk.f32.gmra.mxu0 %vm264_vm0, %v222_v11  ;;  %1347 = vmatmul.msk.f32.gmra.mxu1 %vm264_vm0, %v222_v11 }
  0x46   : > { %1343 = vmatmul.msk.f32.gmra.mxu0 %vm264_vm0, %v223_v12  ;;  %1348 = vmatmul.msk.f32.gmra.mxu1 %vm264_vm0, %v223_v12 }
  0x4e   : > { %1344 = vmatmul.msk.f32.gmra.mxu0 %vm264_vm0, %v224_v13  ;;  %1349 = vmatmul.msk.f32.gmra.mxu1 %vm264_vm0, %v224_v13 }
  0x56   : > { %1345 = vmatmul.msk.f32.gmra.mxu0 %vm264_vm0, %v225_v14  ;;  %1350 = vmatmul.msk.f32.gmra.mxu1 %vm264_vm0, %v225_v14 }
  0xa6   : > { %v262_v23 = vpop.permute.xlu0 %261 }
  0xb3   : > { %v1911_v15 = vpop.f32.mrf.mxu0  ;;  %v1913_v16 = vpop.f32.mrf.mxu1 }
  0xb4   : > { %2762 = vst [vmem:[#allocation9_spill] sm:$0xff] %v1911_v15 }
  0xb5   : > { %2763 = vst [vmem:[#allocation10_spill] sm:$0xff] %v1913_v16 }
  0xbb   : > { %v1915_v17 = vpop.f32.mrf.mxu0  ;;  %v1917_v18 = vpop.f32.mrf.mxu1 }
  0xbc   : > { %2764 = vst [vmem:[#allocation11_spill] sm:$0xff] %v1915_v17 }
  0xbd   : > { %2765 = vst [vmem:[#allocation12_spill] sm:$0xff] %v1917_v18 }
  0xc3   : > { %v1919_v19 = vpop.f32.mrf.mxu0  ;;  %v1921_v20 = vpop.f32.mrf.mxu1 }
  0xc4   : > { %2766 = vst [vmem:[#allocation13_spill] sm:$0xff] %v1919_v19 }
  0xc5   : > { %2767 = vst [vmem:[#allocation14_spill] sm:$0xff] %v1921_v20 }
  0xcb   : > { %v1923_v21 = vpop.f32.mrf.mxu0  ;;  %v1925_v22 = vpop.f32.mrf.mxu1 }
  0xcc   : > { %2768 = vst [vmem:[#allocation15_spill] sm:$0xff] %v1923_v21 }
  0xcd   : > { %2769 = vst [vmem:[#allocation16_spill] sm:$0xff] %v1925_v22 }
  0xd3   : > { %v309_v24 = vpop.f32.mrf.mxu0  ;;  %v341_v25 = vpop.f32.mrf.mxu1 }
  0xd4   : > { %v310_v26 = vadd.f32 %v309_v24, %v262_v23  ;;  %v342_v27 = vadd.f32 %v341_v25, %v262_v23  ;;  %v228_v25 = vld [vmem:[%s2734_s2 + $0x10] sm:$0xff] }
  0xd6   : > { %v344_v28 = vpack.c.bf16 %v310_v26, %v310_v26  ;;  %v345_v29 = vpack.c.bf16 %v342_v27, %v342_v27 }
  0xd8   : > { %v348_v30 = vrot.slane %v344_v28, 2  ;;  %v349_v31 = vrot.slane %v345_v29, 2  ;;  %v427_v32 = vsel %vm425_vm1, %v344_v28, 0  ;;  %v430_v33 = vsel %vm425_vm1, %v345_v29, 0 }
  0xd9   : > { %439 = vmatpush.bf16.msrb.mxu0 %v427_v32  ;;  %1390 = vmatpush.bf16.msra.mxu2 %v427_v32 }
  0xda   : > { %528 = vmatpush.bf16.msrb.mxu1 %v430_v33  ;;  %1391 = vmatpush.bf16.msra.mxu3 %v430_v33 }
  0xdb   : > { %352 = vxpose.binary.xlu0.c.b16.start.end [1/2] (short) %v349_v31, %v348_v30, 128 }
 0x187   : > { %v360_v34 = vpop.trf.xlu0 }
 0x188   : > { %1351 = vmatmul.msk.bf16.vlgmr.msrb.gmra.mxu0 %vm376_vm2, %v360_v34  ;;  %1367 = vmatmul.msk.bf16.vlgmr.msrb.gmra.mxu1 %vm376_vm2, %v360_v34 }
 0x18f   : > { %v361_v35 = vpop.trf.xlu0 }
 0x197   : > { %v362_v36 = vpop.trf.xlu0 }
 0x198   : > { %1352 = vmatmul.msk.bf16.gmra.mxu0 %vm376_vm2, %v362_v36  ;;  %1368 = vmatmul.msk.bf16.gmra.mxu1 %vm376_vm2, %v362_v36 }
 0x19f   : > { %v363_v37 = vpop.trf.xlu0 }
 0x1a7   : > { %v364_v38 = vpop.trf.xlu0 }
 0x1a8   : > { %1353 = vmatmul.msk.bf16.gmra.mxu0 %vm376_vm2, %v364_v38  ;;  %1369 = vmatmul.msk.bf16.gmra.mxu1 %vm376_vm2, %v364_v38 }
 0x1af   : > { %v365_v39 = vpop.trf.xlu0 }
 0x1b7   : > { %v366_v40 = vpop.trf.xlu0 }
 0x1b8   : > { %1354 = vmatmul.msk.bf16.gmra.mxu0 %vm376_vm2, %v366_v40  ;;  %1370 = vmatmul.msk.bf16.gmra.mxu1 %vm376_vm2, %v366_v40 }
 0x1bf   : > { %v367_v41 = vpop.trf.xlu0 }
 0x1c7   : > { %v368_v42 = vpop.trf.xlu0 }
 0x1c8   : > { %1355 = vmatmul.msk.bf16.vlgmr.msra.gmra.mxu2 %vm376_vm2, %v368_v42  ;;  %1371 = vmatmul.msk.bf16.vlgmr.msra.gmra.mxu3 %vm376_vm2, %v368_v42 }
 0x1cf   : > { %v369_v43 = vpop.trf.xlu0 }
 0x1d7   : > { %v370_v44 = vpop.trf.xlu0 }
 0x1d8   : > { %1356 = vmatmul.msk.bf16.gmra.mxu2 %vm376_vm2, %v370_v44  ;;  %1372 = vmatmul.msk.bf16.gmra.mxu3 %vm376_vm2, %v370_v44 }
 0x1df   : > { %v371_v45 = vpop.trf.xlu0 }
 0x1e7   : > { %v372_v46 = vpop.trf.xlu0 }
 0x1e8   : > { %1357 = vmatmul.msk.bf16.gmra.mxu2 %vm376_vm2, %v372_v46  ;;  %1373 = vmatmul.msk.bf16.gmra.mxu3 %vm376_vm2, %v372_v46 }
 0x1ef   : > { %v1941_v47 = vpop.trf.xlu0 }
 0x1f7   : > { %v374_v48 = vpop.trf.xlu0 }
 0x1f8   : > { %1358 = vmatmul.msk.bf16.gmra.mxu2 %vm376_vm2, %v374_v48  ;;  %1374 = vmatmul.msk.bf16.gmra.mxu3 %vm376_vm2, %v374_v48 }
 0x1ff   : > { %v375_v42 = vpop.trf.xlu0 }
 0x205   : > { %v1945_v49 = vpop.f32.mrf.mxu0  ;;  %v1947_v50 = vpop.f32.mrf.mxu1 }
 0x206   : > { %v610_v9 = vmax.f32 %v1945_v49, %v1947_v50 }
 0x208   : > { %1359 = vmatmul.msk.bf16.gmra.mxu2 %vm376_vm2, %v361_v35  ;;  %1375 = vmatmul.msk.bf16.gmra.mxu3 %vm376_vm2, %v361_v35 }
 0x20d   : > { %v1951_v51 = vpop.f32.mrf.mxu0  ;;  %v1953_v52 = vpop.f32.mrf.mxu1 }
 0x20e   : > { %v613_v13 = vmax.f32 %v1951_v51, %v1953_v52 }
 0x215   : > { %v1955_v53 = vpop.f32.mrf.mxu0  ;;  %v1957_v54 = vpop.f32.mrf.mxu1 }
 0x216   : > { %v616_v4 = vmax.f32 %v1955_v53, %v1957_v54 }
 0x218   : > { %1360 = vmatmul.msk.bf16.gmra.mxu2 %vm376_vm2, %v363_v37  ;;  %1376 = vmatmul.msk.bf16.gmra.mxu3 %vm376_vm2, %v363_v37 }
 0x21d   : > { %v1961_v55 = vpop.f32.mrf.mxu0  ;;  %v1963_v56 = vpop.f32.mrf.mxu1 }
 0x21e   : > { %v619_v10 = vmax.f32 %v1961_v55, %v1963_v56 }
 0x225   : > { %v1965_v57 = vpop.f32.mrf.mxu0  ;;  %v1967_v58 = vpop.f32.mrf.mxu1 }
 0x226   : > { %v622_v2 = vmax.f32 %v1965_v57, %v1967_v58 }
 0x228   : > { %1361 = vmatmul.msk.bf16.gmra.mxu2 %vm376_vm2, %v365_v39  ;;  %1377 = vmatmul.msk.bf16.gmra.mxu3 %vm376_vm2, %v365_v39 }
 0x22d   : > { %v1971_v59 = vpop.f32.mrf.mxu0  ;;  %v1973_v60 = vpop.f32.mrf.mxu1 }
 0x22e   : > { %v625_v5 = vmax.f32 %v1971_v59, %v1973_v60 }
 0x235   : > { %v1975_v61 = vpop.f32.mrf.mxu0  ;;  %v1977_v62 = vpop.f32.mrf.mxu1 }
 0x236   : > { %v628_v63 = vmax.f32 %v1975_v61, %v1977_v62 }
 0x238   : > { %629 = vmax.xlane.f32.xlu2 %v628_v63  ;;  %1362 = vmatmul.msk.bf16.gmra.mxu2 %vm376_vm2, %v367_v41 }
 0x239   : > { %1378 = vmatmul.msk.bf16.gmra.mxu3 %vm376_vm2, %v367_v41 }
 0x23d   : > { %v1983_v0 = vpop.f32.mrf.mxu0  ;;  %v1985_v1 = vpop.f32.mrf.mxu1 }
 0x23e   : > { %v631_v3 = vmax.f32 %v1983_v0, %v1985_v1 }
 0x240   : > { %623 = vmax.xlane.f32.xlu2 %v622_v2  ;;  %632 = vmax.xlane.f32.xlu1 %v631_v3 }
 0x248   : > { %617 = vmax.xlane.f32.xlu2 %v616_v4  ;;  %626 = vmax.xlane.f32.xlu1 %v625_v5 }
 0x249   : > { %1363 = vmatmul.msk.bf16.gmra.mxu2 %vm376_vm2, %v369_v43  ;;  %1379 = vmatmul.msk.bf16.gmra.mxu3 %vm376_vm2, %v369_v43 }
 0x24b   : > { %v1997_v6 = vpop.f32.mrf.mxu2  ;;  %v1999_v7 = vpop.f32.mrf.mxu3 }
 0x24c   : > { %v634_v8 = vmax.f32 %v1997_v6, %v1999_v7 }
 0x24e   : > { %635 = vmax.xlane.f32.xlu0 %v634_v8 }
 0x250   : > { %611 = vmax.xlane.f32.xlu2 %v610_v9  ;;  %620 = vmax.xlane.f32.xlu1 %v619_v10 }
 0x253   : > { %v2007_v11 = vpop.f32.mrf.mxu2  ;;  %v2009_v12 = vpop.f32.mrf.mxu3 }
 0x254   : > { %v637_v24 = vmax.f32 %v2007_v11, %v2009_v12 }
 0x258   : > { %614 = vmax.xlane.f32.xlu1 %v613_v13 }
 0x259   : > { %1364 = vmatmul.msk.bf16.gmra.mxu2 %vm376_vm2, %v371_v45  ;;  %1380 = vmatmul.msk.bf16.gmra.mxu3 %vm376_vm2, %v371_v45 }
 0x25b   : > { %v2015_v14 = vpop.f32.mrf.mxu2  ;;  %v2017_v23 = vpop.f32.mrf.mxu3 }
 0x25c   : > { %v640_v29 = vmax.f32 %v2015_v14, %v2017_v23 }
 0x260   : > { %638 = vmax.xlane.f32.xlu1 %v637_v24 }
 0x262   : > { %251 = vperm.xlu0 %1443, %v228_v25  }
 0x263   : > { %v2024_v26 = vpop.f32.mrf.mxu2  ;;  %v2026_v27 = vpop.f32.mrf.mxu3 }
 0x264   : > { %v643_v28 = vmax.f32 %v2024_v26, %v2026_v27 }
 0x266   : > { %644 = vmax.xlane.f32.xlu2 %v643_v28 }
 0x268   : > { %641 = vmax.xlane.f32.xlu1 %v640_v29 }
 0x269   : > { %1365 = vmatmul.msk.bf16.gmra.mxu2 %vm376_vm2, %v1941_v47  ;;  %1381 = vmatmul.msk.bf16.gmra.mxu3 %vm376_vm2, %v1941_v47 }
 0x26b   : > { %v2036_v30 = vpop.f32.mrf.mxu2  ;;  %v2038_v31 = vpop.f32.mrf.mxu3 }
 0x26c   : > { %v646_v32 = vmax.f32 %v2036_v30, %v2038_v31 }
 0x270   : > { %647 = vmax.xlane.f32.xlu1 %v646_v32 }
 0x273   : > { %v2042_v33 = vpop.f32.mrf.mxu2  ;;  %v2044_v34 = vpop.f32.mrf.mxu3 }
 0x274   : > { %v649_v35 = vmax.f32 %v2042_v33, %v2044_v34 }
 0x276   : > { %650 = vmax.xlane.f32.xlu2 %v649_v35 }
 0x279   : > { %1366 = vmatmul.msk.bf16.gmra.mxu2 %vm376_vm2, %v375_v42  ;;  %1382 = vmatmul.msk.bf16.gmra.mxu3 %vm376_vm2, %v375_v42 }
 0x27b   : > { %v2048_v36 = vpop.f32.mrf.mxu2  ;;  %v2050_v37 = vpop.f32.mrf.mxu3 }
 0x27c   : > { %v652_v38 = vmax.f32 %v2048_v36, %v2050_v37 }
 0x27e   : > { %653 = vmax.xlane.f32.xlu1 %v652_v38 }
 0x283   : > { %v2054_v39 = vpop.f32.mrf.mxu2  ;;  %v2056_v40 = vpop.f32.mrf.mxu3 }
 0x284   : > { %v655_v41 = vmax.f32 %v2054_v39, %v2056_v40 }
 0x286   : > { %656 = vmax.xlane.f32.xlu1 %v655_v41 }
 0x28b   : > { %v2064_v44 = vpop.f32.mrf.mxu2  ;;  %v2066_v45 = vpop.f32.mrf.mxu3 }
 0x293   : > { %v2072_v2 = vpop.f32.mrf.mxu2  ;;  %v2074_v3 = vpop.f32.mrf.mxu3 }
 0x29b   : > { %v2078_v24 = vpop.f32.mrf.mxu2  ;;  %v2080_v25 = vpop.f32.mrf.mxu3 }
 0x2ab   : > { %v2062_v43 = vpop.xlane.xlu2 %629 }
 0x2b3   : > { %v624_v46 = vpop.xlane.xlu2 %623  ;;  %v2068_v47 = vpop.xlane.xlu1 %632 }
 0x2bb   : > { %v618_v48 = vpop.xlane.xlu2 %617  ;;  %v2070_v63 = vpop.xlane.xlu1 %626 }
 0x2bc   : > { %v710_v38 = vsub.f32 %v1955_v53, %v618_v48  ;;  %v711_v42 = vsub.f32 %v1957_v54, %v618_v48 }
 0x2c3   : > { %v612_v4 = vpop.xlane.xlu2 %611  ;;  %v621_v5 = vpop.xlane.xlu1 %620 }
 0x2c4   : > { %v706_v8 = vsub.f32 %v1945_v49, %v612_v4  ;;  %v707_v9 = vsub.f32 %v1947_v50, %v612_v4  ;;  %v712_v53 = vsub.f32 %v1961_v55, %v621_v5  ;;  %v713_v54 = vsub.f32 %v1963_v56, %v621_v5 }
 0x2c5   : > { %v714_v56 = vsub.f32 %v1965_v57, %v624_v46  ;;  %v715_v5 = vsub.f32 %v1967_v58, %v624_v46  ;;  %v716_v58 = vsub.f32 %v1971_v59, %v2070_v63  ;;  %v717_v46 = vsub.f32 %v1973_v60, %v2070_v63 }
 0x2c6   : > { %v770_v10 = vmul.f32 1.442695, %v706_v8  ;;  %v772_v13 = vmul.f32 1.442695, %v707_v9  ;;  %v2092_v8 = vpop.f32.mrf.mxu2  ;;  %v2094_v9 = vpop.f32.mrf.mxu3  ;;  %v718_v59 = vsub.f32 %v1975_v61, %v2062_v43  ;;  %v719_v60 = vsub.f32 %v1977_v62, %v2062_v43 }
 0x2c7   : > { %v720_v62 = vsub.f32 %v1983_v0, %v2068_v47  ;;  %v721_v43 = vsub.f32 %v1985_v1, %v2068_v47 }
 0x2c8   : > { %1446 = vpow2.f32 %v770_v10 }
 0x2c9   : > { %1448 = vpow2.f32 %v772_v13 }
 0x2cb   : > { %v615_v28 = vpop.xlane.xlu1 %614 }
 0x2cc   : > { %v708_v29 = vsub.f32 %v1951_v51, %v615_v28  ;;  %v709_v32 = vsub.f32 %v1953_v52, %v615_v28  ;;  %v778_v51 = vmul.f32 1.442695, %v710_v38  ;;  %v780_v52 = vmul.f32 1.442695, %v711_v42 }
 0x2cd   : > { %v658_v28 = vmax.f32 %v2064_v44, %v2066_v45 }
 0x2ce   : > { %v2084_v35 = vpop.eup %1446  ;;  %v774_v49 = vmul.f32 1.442695, %v708_v29  ;;  %v776_v41 = vmul.f32 1.442695, %v709_v32  ;;  %v782_v29 = vmul.f32 1.442695, %v712_v53  ;;  %v2106_v32 = vpop.f32.mrf.mxu2 }
 0x2cf   : > { %v2087_v50 = vpop.eup %1448  ;;  %v2108_v38 = vpop.f32.mrf.mxu3 }
 0x2d0   : > { %1450 = vpow2.f32 %v774_v49  ;;  %v898_v4 = vadd.f32 %v2087_v50, %v2084_v35  ;;  %v784_v49 = vmul.f32 1.442695, %v713_v54 }
 0x2d1   : > { %1452 = vpow2.f32 %v776_v41 }
 0x2d2   : > { %899 = vadd.xlane.f32.xlu2 %v898_v4  ;;  %1454 = vpow2.f32 %v778_v51  ;;  %v661_v4 = vmax.f32 %v2072_v2, %v2074_v3  ;;  %v786_v51 = vmul.f32 1.442695, %v714_v56  ;;  %v792_v56 = vmul.f32 1.442695, %v717_v46 }
 0x2d3   : > { %1456 = vpow2.f32 %v780_v52  ;;  %v788_v52 = vmul.f32 1.442695, %v715_v5  ;;  %v796_v46 = vmul.f32 1.442695, %v719_v60  ;;  %v798_v60 = vmul.f32 1.442695, %v720_v62 }
 0x2d4   : > { %1458 = vpow2.f32 %v782_v29  ;;  %v664_v29 = vmax.f32 %v2078_v24, %v2080_v25 }
 0x2d5   : > { %1460 = vpow2.f32 %v784_v49  ;;  %v790_v49 = vmul.f32 1.442695, %v716_v58  ;;  %v794_v58 = vmul.f32 1.442695, %v718_v59 }
 0x2d6   : > { %v2096_v10 = vpop.eup %1450  ;;  %1462 = vpow2.f32 %v786_v51 }
 0x2d7   : > { %v2099_v13 = vpop.eup %1452  ;;  %v2126_v57 = vpop.f32.mrf.mxu3  ;;  %1464 = vpow2.f32 %v788_v52  ;;  %v667_v52 = vmax.f32 %v2092_v8, %v2094_v9 }
 0x2d8   : > { %v901_v48 = vadd.f32 %v2099_v13, %v2096_v10  ;;  %v2110_v55 = vpop.eup %1454  ;;  %1466 = vpow2.f32 %v790_v49  ;;  %v670_v49 = vmax.f32 %v2106_v32, %v2108_v38 }
 0x2d9   : > { %v2112_v41 = vpop.eup %1456  ;;  %1468 = vpow2.f32 %v792_v56 }
 0x2da   : > { %902 = vadd.xlane.f32.xlu1 %v901_v48  ;;  %659 = vmax.xlane.f32.xlu2 %v658_v28  ;;  %v904_v42 = vadd.f32 %v2112_v41, %v2110_v55  ;;  %v2120_v53 = vpop.eup %1458  ;;  %v2124_v48 = vpop.f32.mrf.mxu2  ;;  %1470 = vpow2.f32 %v794_v58 }
 0x2db   : > { %v2122_v54 = vpop.eup %1460  ;;  %1472 = vpow2.f32 %v796_v46  ;;  %v673_v47 = vmax.f32 %v2124_v48, %v2126_v57  ;;  %v639_v58 = vpop.xlane.xlu1 %638 }
 0x2dc   : > { %v907_v28 = vadd.f32 %v2122_v54, %v2120_v53  ;;  %v2136_v5 = vpop.eup %1462  ;;  %1474 = vpow2.f32 %v798_v60  ;;  %v636_v46 = vpop.xlane.xlu0 %635  ;;  %v724_v19 = vsub.f32 %v2007_v11, %v639_v58  ;;  %v725_v18 = vsub.f32 %v2009_v12, %v639_v58 }
 0x2dd   : > { %v722_v60 = vsub.f32 %v1997_v6, %v636_v46 }
 0x2de   : > { %v806_v17 = vmul.f32 1.442695, %v724_v19  ;;  %v808_v11 = vmul.f32 1.442695, %v725_v18 }
 0x2e2   : > { %905 = vadd.xlane.f32.xlu2 %v904_v42  ;;  %662 = vmax.xlane.f32.xlu1 %v661_v4  ;;  %v2138_v42 = vpop.eup %1464  ;;  %v2144_v63 = vpop.f32.mrf.mxu2 }
 0x2e3   : > { %v2146_v4 = vpop.f32.mrf.mxu3  ;;  %v910_v51 = vadd.f32 %v2138_v42, %v2136_v5  ;;  %v2152_v61 = vpop.eup %1466 }
 0x2e4   : > { %v676_v22 = vmax.f32 %v2144_v63, %v2146_v4  ;;  %v642_v16 = vpop.xlane.xlu1 %641 }
 0x2ea   : > { %908 = vadd.xlane.f32.xlu1 %v907_v28  ;;  %665 = vmax.xlane.f32.xlu2 %v664_v29  ;;  %v2154_v28 = vpop.eup %1468  ;;  %v2164_v56 = vpop.f32.mrf.mxu2 }
 0x2eb   : > { %v913_v29 = vadd.f32 %v2154_v28, %v2152_v61  ;;  %v2166_v59 = vpop.f32.mrf.mxu3 }
 0x2f2   : > { %911 = vadd.xlane.f32.xlu2 %v910_v51  ;;  %668 = vmax.xlane.f32.xlu1 %v667_v52  ;;  %v800_v51 = vmul.f32 1.442695, %v721_v43  ;;  %v2168_v52 = vpop.eup %1470  ;;  %v2176_v62 = vpop.f32.mrf.mxu2 }
 0x2f3   : > { %v2170_v0 = vpop.eup %1472 }
 0x2f4   : > { %1476 = vpow2.f32 %v800_v51  ;;  %v916_v1 = vadd.f32 %v2170_v0, %v2168_v52  ;;  %v2180_v43 = vpop.eup %1474  ;;  %v723_v51 = vsub.f32 %v1999_v7, %v636_v46  ;;  %v726_v7 = vsub.f32 %v2015_v14, %v642_v16 }
 0x2f5   : > { %v727_v46 = vsub.f32 %v2017_v23, %v642_v16  ;;  %v645_v23 = vpop.xlane.xlu2 %644 }
 0x2f7   : > { %v812_v12 = vmul.f32 1.442695, %v727_v46  ;;  %v728_v46 = vsub.f32 %v2024_v26, %v645_v23 }
 0x2fa   : > { %914 = vadd.xlane.f32.xlu1 %v913_v29  ;;  %671 = vmax.xlane.f32.xlu2 %v670_v49  ;;  %v2178_v29 = vpop.f32.mrf.mxu3  ;;  %v2182_v49 = vpop.eup %1476 }
 0x2fb   : > { %v919_v20 = vadd.f32 %v2182_v49, %v2180_v43  ;;  %v2192_v21 = vpop.f32.mrf.mxu2 }
 0x302   : > { %917 = vadd.xlane.f32.xlu2 %v916_v1  ;;  %674 = vmax.xlane.f32.xlu1 %v673_v47  ;;  %v802_v1 = vmul.f32 1.442695, %v722_v60  ;;  %v804_v47 = vmul.f32 1.442695, %v723_v51  ;;  %v2194_v6 = vpop.f32.mrf.mxu3  ;;  %v810_v60 = vmul.f32 1.442695, %v726_v7 }
 0x303   : > { %v2206_v16 = vpop.f32.mrf.mxu2  ;;  %v685_v14 = vmax.f32 %v2192_v21, %v2194_v6 }
 0x304   : > { %1478 = vpow2.f32 %v802_v1 }
 0x305   : > { %1480 = vpow2.f32 %v804_v47  ;;  %v648_v47 = vpop.xlane.xlu1 %647 }
 0x306   : > { %1482 = vpow2.f32 %v806_v17 }
 0x307   : > { %1484 = vpow2.f32 %v808_v11  ;;  %v730_v11 = vsub.f32 %v2036_v30, %v648_v47 }
 0x308   : > { %1486 = vpow2.f32 %v810_v60  ;;  %v731_v60 = vsub.f32 %v2038_v31, %v648_v47 }
 0x309   : > { %1488 = vpow2.f32 %v812_v12  ;;  %v814_v12 = vmul.f32 1.442695, %v728_v46  ;;  %v818_v26 = vmul.f32 1.442695, %v730_v11  ;;  %v651_v46 = vpop.xlane.xlu2 %650 }
 0x30a   : > { %920 = vadd.xlane.f32.xlu1 %v919_v20  ;;  %677 = vmax.xlane.f32.xlu2 %v676_v22  ;;  %v679_v20 = vmax.f32 %v2164_v56, %v2166_v59  ;;  %v682_v22 = vmax.f32 %v2176_v62, %v2178_v29  ;;  %v2202_v58 = vpop.eup %1478  ;;  %v2208_v19 = vpop.f32.mrf.mxu3 }
 0x30b   : > { %2770 = vst [vmem:[#allocation17_spill] sm:$0xff] %v2202_v58  ;;  %v2204_v51 = vpop.eup %1480  ;;  %1490 = vpow2.f32 %v814_v12  ;;  %v688_v30 = vmax.f32 %v2206_v16, %v2208_v19 }
 0x30c   : > { %2771 = vst [vmem:[#allocation18_spill] sm:$0xff] %v2204_v51  ;;  %v922_v18 = vadd.f32 %v2204_v51, %v2202_v58  ;;  %v2214_v1 = vpop.eup %1482  ;;  %v2230_v51 = vpop.f32.mrf.mxu2 }
 0x30d   : > { %2772 = vst [vmem:[#allocation19_spill] sm:$0xff] %v2214_v1  ;;  %v2216_v17 = vpop.eup %1484 }
 0x30e   : > { %2773 = vst [vmem:[#allocation20_spill] sm:$0xff] %v2216_v17  ;;  %v2218_v7 = vpop.eup %1486 }
 0x30f   : > { %2774 = vst [vmem:[#allocation21_spill] sm:$0xff] %v2218_v7 }
 0x312   : > { %680 = vmax.xlane.f32.xlu1 %v679_v20  ;;  %683 = vmax.xlane.f32.xlu2 %v682_v22  ;;  %v2221_v20 = vpop.eup %1488  ;;  %v729_v22 = vsub.f32 %v2026_v27, %v645_v23  ;;  %v2232_v58 = vpop.f32.mrf.mxu3  ;;  %v820_v27 = vmul.f32 1.442695, %v731_v60 }
 0x313   : > { %2775 = vst [vmem:[#allocation22_spill] sm:$0xff] %v2221_v20  ;;  %v691_v31 = vmax.f32 %v2230_v51, %v2232_v58  ;;  %v654_v23 = vpop.xlane.xlu1 %653  ;;  %v2238_v47 = vpop.eup %1490 }
 0x314   : > { %v816_v15 = vmul.f32 1.442695, %v729_v22  ;;  %2776 = vst [vmem:[#allocation23_spill] sm:$0xff] %v2238_v47  ;;  %v2242_v11 = vpop.f32.mrf.mxu2 }
 0x316   : > { %1492 = vpow2.f32 %v816_v15 }
 0x317   : > { %1494 = vpow2.f32 %v818_v26 }
 0x318   : > { %1496 = vpow2.f32 %v820_v27 }
 0x31a   : > { %686 = vmax.xlane.f32.xlu1 %v685_v14  ;;  %923 = vadd.xlane.f32.xlu2 %v922_v18  ;;  %v925_v14 = vadd.f32 %v2216_v17, %v2214_v1  ;;  %v928_v18 = vadd.f32 %v2221_v20, %v2218_v7  ;;  %v2244_v60 = vpop.f32.mrf.mxu3  ;;  %v734_v20 = vsub.f32 %v2048_v36, %v654_v23 }
 0x31b   : > { %v657_v17 = vpop.xlane.xlu1 %656  ;;  %v735_v1 = vsub.f32 %v2050_v37, %v654_v23 }
 0x31c   : > { %v2240_v22 = vpop.eup %1492  ;;  %v2258_v7 = vpop.f32.mrf.mxu2 }
 0x31d   : > { %2777 = vst [vmem:[#allocation24_spill] sm:$0xff] %v2240_v22  ;;  %v2246_v15 = vpop.eup %1494  ;;  %v931_v26 = vadd.f32 %v2240_v22, %v2238_v47  ;;  %v826_v22 = vmul.f32 1.442695, %v734_v20  ;;  %v828_v36 = vmul.f32 1.442695, %v735_v1 }
 0x31e   : > { %2778 = vst [vmem:[#allocation25_spill] sm:$0xff] %v2246_v15  ;;  %v2248_v12 = vpop.eup %1496 }
 0x31f   : > { %2779 = vst [vmem:[#allocation26_spill] sm:$0xff] %v2248_v12  ;;  %v934_v27 = vadd.f32 %v2248_v12, %v2246_v15 }
 0x322   : > { %926 = vadd.xlane.f32.xlu1 %v925_v14  ;;  %929 = vadd.xlane.f32.xlu2 %v928_v18  ;;  %v732_v14 = vsub.f32 %v2042_v33, %v651_v46  ;;  %v733_v18 = vsub.f32 %v2044_v34, %v651_v46  ;;  %v2260_v33 = vpop.f32.mrf.mxu3  ;;  %v736_v34 = vsub.f32 %v2054_v39, %v657_v17 }
 0x323   : > { %v737_v46 = vsub.f32 %v2056_v40, %v657_v17 }
 0x324   : > { %v2272_v39 = vpop.f32.mrf.mxu2 }
 0x325   : > { %v832_v37 = vmul.f32 1.442695, %v737_v46 }
 0x32a   : > { %689 = vmax.xlane.f32.xlu1 %v688_v30  ;;  %692 = vmax.xlane.f32.xlu2 %v691_v31  ;;  %v822_v30 = vmul.f32 1.442695, %v732_v14  ;;  %v824_v31 = vmul.f32 1.442695, %v733_v18  ;;  %v694_v14 = vmax.f32 %v2242_v11, %v2244_v60  ;;  %v697_v18 = vmax.f32 %v2258_v7, %v2260_v33  ;;  %v2274_v40 = vpop.f32.mrf.mxu3 }
 0x32b   : > { %v700_v17 = vmax.f32 %v2272_v39, %v2274_v40 }
 0x32c   : > { %1498 = vpow2.f32 %v822_v30 }
 0x32d   : > { %1500 = vpow2.f32 %v824_v31 }
 0x32e   : > { %1502 = vpow2.f32 %v826_v22 }
 0x32f   : > { %1504 = vpow2.f32 %v828_v36 }
 0x332   : > { %932 = vadd.xlane.f32.xlu1 %v931_v26  ;;  %935 = vadd.xlane.f32.xlu2 %v934_v27  ;;  %v830_v26 = vmul.f32 1.442695, %v736_v34  ;;  %v2268_v23 = vpop.eup %1498  ;;  %v2294_v36 = vpop.f32.mrf.mxu3 }
 0x333   : > { %v2270_v27 = vpop.eup %1500 }
 0x334   : > { %2780 = vst [vmem:[#allocation27_spill] sm:$0xff] %v2270_v27  ;;  %1506 = vpow2.f32 %v830_v26  ;;  %v937_v1 = vadd.f32 %v2270_v27, %v2268_v23  ;;  %v2280_v20 = vpop.eup %1502  ;;  %v2298_v27 = vstv %s220_s9 }
 0x335   : > { %1508 = vpow2.f32 %v832_v37  ;;  %v2282_v22 = vpop.eup %1504 }
 0x336   : > { %2781 = vst [vmem:[#allocation28_spill] sm:$0xff] %v2282_v22 }
 0x33a   : > { %695 = vmax.xlane.f32.xlu1 %v694_v14  ;;  %698 = vmax.xlane.f32.xlu2 %v697_v18  ;;  %v2284_v30 = vpop.eup %1506  ;;  %v940_v14 = vadd.f32 %v2282_v22, %v2280_v20  ;;  %v2292_v18 = vpop.f32.mrf.mxu2 }
 0x33b   : > { %v2286_v31 = vpop.eup %1508 }
 0x33c   : > { %2782 = vst [vmem:[#allocation29_spill] sm:$0xff] %v2286_v31  ;;  %v943_v46 = vadd.f32 %v2286_v31, %v2284_v30  ;;  %v703_v31 = vmax.f32 %v2292_v18, %v2294_v36 }
 0x342   : > { %938 = vadd.xlane.f32.xlu1 %v937_v1  ;;  %701 = vmax.xlane.f32.xlu2 %v700_v17 }
 0x345   : > { %v900_v34 = vpop.xlane.xlu2 %899 }
 0x346   : > { %1510 = vrcp.f32 %v900_v34 }
 0x34a   : > { %944 = vadd.xlane.f32.xlu1 %v943_v46  ;;  %941 = vadd.xlane.f32.xlu2 %v940_v14 }
 0x34c   : > { %v1511_v12 = vpop.eup %1510 }
 0x34d   : > { %v903_v26 = vpop.xlane.xlu1 %902  ;;  %v660_v37 = vpop.xlane.xlu2 %659  ;;  %v1027_v14 = vmul.f32 %v1511_v12, %v2298_v27 }
 0x34e   : > { %1512 = vrcp.f32 %v903_v26  ;;  %v738_v17 = vsub.f32 %v2064_v44, %v660_v37  ;;  %v739_v1 = vsub.f32 %v2066_v45, %v660_v37 }
 0x34f   : > { %v2307_v15 = vmul.f32 %v2084_v35, %v1027_v14 }
 0x350   : > { %v834_v34 = vmul.f32 1.442695, %v738_v17  ;;  %v836_v46 = vmul.f32 1.442695, %v739_v1 }
 0x352   : > { %1514 = vpow2.f32 %v834_v34  ;;  %704 = vmax.xlane.f32.xlu2 %v703_v31  ;;  %v2313_v31 = vmul.f32 %v2087_v50, %v1027_v14 }
 0x353   : > { %1516 = vpow2.f32 %v836_v46 }
 0x354   : > { %v1513_v22 = vpop.eup %1512 }
 0x355   : > { %v1028_v26 = vmul.f32 %v1513_v22, %v2298_v27  ;;  %v906_v47 = vpop.xlane.xlu2 %905  ;;  %v663_v44 = vpop.xlane.xlu1 %662 }
 0x356   : > { %v740_v45 = vsub.f32 %v2072_v2, %v663_v44  ;;  %v741_v37 = vsub.f32 %v2074_v3, %v663_v44  ;;  %1518 = vrcp.f32 %v906_v47 }
 0x357   : > { %v2310_v17 = vmul.f32 %v2096_v10, %v1028_v26  ;;  %v2316_v12 = vmul.f32 %v2099_v13, %v1028_v26 }
 0x358   : > { %v2318_v1 = vpop.eup %1514  ;;  %v838_v22 = vmul.f32 1.442695, %v740_v45  ;;  %v840_v34 = vmul.f32 1.442695, %v741_v37 }
 0x359   : > { %v2320_v46 = vpop.eup %1516 }
 0x35a   : > { %1520 = vpow2.f32 %v838_v22  ;;  %v946_v35 = vadd.f32 %v2320_v46, %v2318_v1 }
 0x35b   : > { %1522 = vpow2.f32 %v840_v34 }
 0x35c   : > { %947 = vadd.xlane.f32.xlu2 %v946_v35  ;;  %v1519_v47 = vpop.eup %1518 }
 0x35d   : > { %v909_v50 = vpop.xlane.xlu1 %908  ;;  %v666_v10 = vpop.xlane.xlu2 %665  ;;  %v1029_v34 = vmul.f32 %v1519_v47, %v2298_v27 }
 0x35e   : > { %1524 = vrcp.f32 %v909_v50  ;;  %v742_v13 = vsub.f32 %v2078_v24, %v666_v10  ;;  %v743_v14 = vsub.f32 %v2080_v25, %v666_v10 }
 0x35f   : > { %v2347_v3 = vmul.f32 %v2112_v41, %v1029_v34 }
 0x360   : > { %v2330_v26 = vpop.eup %1520  ;;  %v842_v44 = vmul.f32 1.442695, %v742_v13  ;;  %v844_v45 = vmul.f32 1.442695, %v743_v14  ;;  %v2341_v14 = vmul.f32 %v2110_v55, %v1029_v34 }
 0x361   : > { %v2332_v37 = vpop.eup %1522 }
 0x362   : > { %1526 = vpow2.f32 %v842_v44  ;;  %v949_v22 = vadd.f32 %v2332_v37, %v2330_v26 }
 0x363   : > { %1528 = vpow2.f32 %v844_v45 }
 0x364   : > { %v1525_v35 = vpop.eup %1524  ;;  %950 = vadd.xlane.f32.xlu1 %v949_v22 }
 0x365   : > { %v1030_v24 = vmul.f32 %v1525_v35, %v2298_v27  ;;  %v912_v50 = vpop.xlane.xlu2 %911  ;;  %v669_v25 = vpop.xlane.xlu1 %668 }
 0x366   : > { %v744_v10 = vsub.f32 %v2092_v8, %v669_v25  ;;  %v745_v13 = vsub.f32 %v2094_v9, %v669_v25  ;;  %1530 = vrcp.f32 %v912_v50 }
 0x367   : > { %v2344_v44 = vmul.f32 %v2120_v53, %v1030_v24  ;;  %v2350_v47 = vmul.f32 %v2122_v54, %v1030_v24 }
 0x368   : > { %v2352_v45 = vpop.eup %1526  ;;  %v846_v22 = vmul.f32 1.442695, %v744_v10  ;;  %v848_v35 = vmul.f32 1.442695, %v745_v13 }
 0x369   : > { %v2354_v2 = vpop.eup %1528 }
 0x36a   : > { %1532 = vpow2.f32 %v846_v22  ;;  %v952_v55 = vadd.f32 %v2354_v2, %v2352_v45 }
 0x36b   : > { %1534 = vpow2.f32 %v848_v35 }
 0x36c   : > { %953 = vadd.xlane.f32.xlu2 %v952_v55  ;;  %v1531_v24 = vpop.eup %1530 }
 0x36d   : > { %v915_v41 = vpop.xlane.xlu1 %914  ;;  %v672_v53 = vpop.xlane.xlu2 %671  ;;  %v1031_v35 = vmul.f32 %v1531_v24, %v2298_v27 }
 0x36e   : > { %1536 = vrcp.f32 %v915_v41  ;;  %v746_v54 = vsub.f32 %v2106_v32, %v672_v53  ;;  %v747_v34 = vsub.f32 %v2108_v38, %v672_v53 }
 0x36f   : > { %v2381_v9 = vmul.f32 %v2138_v42, %v1031_v35 }
 0x370   : > { %v2364_v50 = vpop.eup %1532  ;;  %v850_v25 = vmul.f32 1.442695, %v746_v54  ;;  %v852_v10 = vmul.f32 1.442695, %v747_v34  ;;  %v2375_v34 = vmul.f32 %v2136_v5, %v1031_v35 }
 0x371   : > { %v2366_v13 = vpop.eup %1534 }
 0x372   : > { %1538 = vpow2.f32 %v850_v25  ;;  %v955_v22 = vadd.f32 %v2366_v13, %v2364_v50 }
 0x373   : > { %1540 = vpow2.f32 %v852_v10 }
 0x374   : > { %v1537_v55 = vpop.eup %1536  ;;  %956 = vadd.xlane.f32.xlu1 %v955_v22 }
 0x375   : > { %v1032_v32 = vmul.f32 %v1537_v55, %v2298_v27  ;;  %v918_v41 = vpop.xlane.xlu2 %917  ;;  %v675_v38 = vpop.xlane.xlu1 %674 }
 0x376   : > { %v748_v53 = vsub.f32 %v2124_v48, %v675_v38  ;;  %v749_v54 = vsub.f32 %v2126_v57, %v675_v38  ;;  %1542 = vrcp.f32 %v918_v41 }
 0x377   : > { %v2378_v25 = vmul.f32 %v2152_v61, %v1032_v32  ;;  %v2384_v24 = vmul.f32 %v2154_v28, %v1032_v32 }
 0x378   : > { %v2386_v10 = vpop.eup %1538  ;;  %v854_v22 = vmul.f32 1.442695, %v748_v53  ;;  %v856_v55 = vmul.f32 1.442695, %v749_v54 }
 0x379   : > { %v2388_v8 = vpop.eup %1540 }
 0x37a   : > { %2783 = vst [vmem:[#allocation30_spill] sm:$0xff] %v2388_v8  ;;  %1544 = vpow2.f32 %v854_v22  ;;  %v958_v5 = vadd.f32 %v2388_v8, %v2386_v10 }
 0x37b   : > { %1546 = vpow2.f32 %v856_v55 }
 0x37c   : > { %959 = vadd.xlane.f32.xlu2 %v958_v5  ;;  %v1543_v32 = vpop.eup %1542 }
 0x37d   : > { %v921_v42 = vpop.xlane.xlu1 %920  ;;  %v678_v61 = vpop.xlane.xlu2 %677  ;;  %v1033_v55 = vmul.f32 %v1543_v32, %v2298_v27 }
 0x37e   : > { %1548 = vrcp.f32 %v921_v42  ;;  %v750_v28 = vsub.f32 %v2144_v63, %v678_v61  ;;  %v751_v35 = vsub.f32 %v2146_v4, %v678_v61 }
 0x37f   : > { %v2411_v57 = vmul.f32 %v2168_v52, %v1033_v55 }
 0x380   : > { %v2398_v41 = vpop.eup %1544  ;;  %v858_v38 = vmul.f32 1.442695, %v750_v28  ;;  %v860_v53 = vmul.f32 1.442695, %v751_v35 }
 0x381   : > { %v2400_v54 = vpop.eup %1546 }
 0x382   : > { %2784 = vst [vmem:[#allocation31_spill] sm:$0xff] %v2400_v54  ;;  %1550 = vpow2.f32 %v858_v38  ;;  %v961_v22 = vadd.f32 %v2400_v54, %v2398_v41 }
 0x383   : > { %1552 = vpow2.f32 %v860_v53  ;;  %v2417_v53 = vmul.f32 %v2170_v0, %v1033_v55 }
 0x384   : > { %v1549_v5 = vpop.eup %1548  ;;  %962 = vadd.xlane.f32.xlu1 %v961_v22 }
 0x385   : > { %v1034_v63 = vmul.f32 %v1549_v5, %v2298_v27  ;;  %v681_v42 = vpop.xlane.xlu1 %680  ;;  %v684_v4 = vpop.xlane.xlu2 %683 }
 0x386   : > { %v752_v61 = vsub.f32 %v2164_v56, %v681_v42  ;;  %v753_v28 = vsub.f32 %v2166_v59, %v681_v42  ;;  %v754_v35 = vsub.f32 %v2176_v62, %v684_v4  ;;  %v755_v38 = vsub.f32 %v2178_v29, %v684_v4 }
 0x387   : > { %v2414_v32 = vmul.f32 %v2180_v43, %v1034_v63  ;;  %v2420_v22 = vmul.f32 %v2182_v49, %v1034_v63 }
 0x388   : > { %v2422_v5 = vpop.eup %1550  ;;  %v862_v56 = vmul.f32 1.442695, %v752_v61  ;;  %v864_v59 = vmul.f32 1.442695, %v753_v28  ;;  %v866_v42 = vmul.f32 1.442695, %v754_v35 }
 0x389   : > { %v2424_v62 = vpop.eup %1552  ;;  %v868_v29 = vmul.f32 1.442695, %v755_v38 }
 0x38a   : > { %2785 = vst [vmem:[#allocation32_spill] sm:$0xff] %v2424_v62  ;;  %1554 = vpow2.f32 %v862_v56  ;;  %v964_v0 = vadd.f32 %v2424_v62, %v2422_v5 }
 0x38b   : > { %1556 = vpow2.f32 %v864_v59 }
 0x38c   : > { %1558 = vpow2.f32 %v866_v42  ;;  %965 = vadd.xlane.f32.xlu2 %v964_v0 }
 0x38d   : > { %1560 = vpow2.f32 %v868_v29  ;;  %v687_v49 = vpop.xlane.xlu1 %686  ;;  %v2432_v55 = vpop.xlane.xlu2 %923 }
 0x38e   : > { %v756_v63 = vsub.f32 %v2192_v21, %v687_v49  ;;  %v757_v4 = vsub.f32 %v2194_v6, %v687_v49 }
 0x390   : > { %v2436_v61 = vpop.eup %1554  ;;  %v870_v28 = vmul.f32 1.442695, %v756_v63  ;;  %v872_v35 = vmul.f32 1.442695, %v757_v4 }
 0x391   : > { %v2438_v38 = vpop.eup %1556 }
 0x392   : > { %2786 = vst [vmem:[#allocation33_spill] sm:$0xff] %v2438_v38  ;;  %v2440_v56 = vpop.eup %1558  ;;  %1562 = vpow2.f32 %v870_v28  ;;  %v967_v59 = vadd.f32 %v2438_v38, %v2436_v61 }
 0x393   : > { %v2444_v42 = vpop.eup %1560  ;;  %1564 = vpow2.f32 %v872_v35 }
 0x394   : > { %2787 = vst [vmem:[#allocation34_spill] sm:$0xff] %v2444_v42  ;;  %968 = vadd.xlane.f32.xlu1 %v967_v59  ;;  %v970_v21 = vadd.f32 %v2444_v42, %v2440_v56 }
 0x395   : > { %v2448_v6 = vpop.xlane.xlu1 %926  ;;  %v2450_v29 = vpop.xlane.xlu2 %929 }
 0x396   : > { %971 = vadd.xlane.f32.xlu2 %v970_v21 }
 0x398   : > { %v2452_v0 = vpop.eup %1562 }
 0x399   : > { %v2454_v49 = vpop.eup %1564 }
 0x39a   : > { %2788 = vst [vmem:[#allocation35_spill] sm:$0xff] %v2454_v49  ;;  %v973_v63 = vadd.f32 %v2454_v49, %v2452_v0 }
 0x39c   : > { %974 = vadd.xlane.f32.xlu1 %v973_v63 }
 0x39d   : > { %v690_v4 = vpop.xlane.xlu1 %689  ;;  %v693_v28 = vpop.xlane.xlu2 %692 }
 0x39e   : > { %v758_v35 = vsub.f32 %v2206_v16, %v690_v4  ;;  %v759_v59 = vsub.f32 %v2208_v19, %v690_v4  ;;  %v760_v43 = vsub.f32 %v2230_v51, %v693_v28  ;;  %v761_v48 = vsub.f32 %v2232_v58, %v693_v28 }
 0x3a0   : > { %v874_v52 = vmul.f32 1.442695, %v758_v35  ;;  %v876_v21 = vmul.f32 1.442695, %v759_v59  ;;  %v878_v8 = vmul.f32 1.442695, %v760_v43 }
 0x3a1   : > { %v880_v54 = vmul.f32 1.442695, %v761_v48 }
 0x3a2   : > { %1566 = vpow2.f32 %v874_v52 }
 0x3a3   : > { %1568 = vpow2.f32 %v876_v21 }
 0x3a4   : > { %1570 = vpow2.f32 %v878_v8 }
 0x3a5   : > { %1572 = vpow2.f32 %v880_v54  ;;  %v933_v62 = vpop.xlane.xlu1 %932  ;;  %v936_v63 = vpop.xlane.xlu2 %935 }
 0x3a8   : > { %v2462_v38 = vpop.eup %1566 }
 0x3a9   : > { %v2464_v42 = vpop.eup %1568 }
 0x3aa   : > { %v2466_v16 = vpop.eup %1570  ;;  %v976_v51 = vadd.f32 %v2464_v42, %v2462_v38 }
 0x3ab   : > { %v2470_v58 = vpop.eup %1572 }
 0x3ac   : > { %2789 = vst [vmem:[#allocation36_spill] sm:$0xff] %v2470_v58  ;;  %977 = vadd.xlane.f32.xlu2 %v976_v51  ;;  %v979_v19 = vadd.f32 %v2470_v58, %v2466_v16 }
 0x3ad   : > { %v696_v48 = vpop.xlane.xlu1 %695  ;;  %v699_v8 = vpop.xlane.xlu2 %698 }
 0x3ae   : > { %980 = vadd.xlane.f32.xlu1 %v979_v19  ;;  %v762_v54 = vsub.f32 %v2242_v11, %v696_v48  ;;  %v763_v52 = vsub.f32 %v2244_v60, %v696_v48  ;;  %v764_v43 = vsub.f32 %v2258_v7, %v699_v8  ;;  %v765_v4 = vsub.f32 %v2260_v33, %v699_v8 }
 0x3b0   : > { %v882_v28 = vmul.f32 1.442695, %v762_v54  ;;  %v884_v35 = vmul.f32 1.442695, %v763_v52  ;;  %v886_v59 = vmul.f32 1.442695, %v764_v43 }
 0x3b1   : > { %v888_v21 = vmul.f32 1.442695, %v765_v4 }
 0x3b2   : > { %1574 = vpow2.f32 %v882_v28 }
 0x3b3   : > { %1576 = vpow2.f32 %v884_v35 }
 0x3b4   : > { %1578 = vpow2.f32 %v886_v59 }
 0x3b5   : > { %1580 = vpow2.f32 %v888_v21  ;;  %v939_v51 = vpop.xlane.xlu1 %938  ;;  %v702_v49 = vpop.xlane.xlu2 %701 }
 0x3b6   : > { %v766_v19 = vsub.f32 %v2272_v39, %v702_v49  ;;  %v767_v11 = vsub.f32 %v2274_v40, %v702_v49 }
 0x3b8   : > { %v2480_v58 = vpop.eup %1574  ;;  %v890_v60 = vmul.f32 1.442695, %v766_v19  ;;  %v892_v7 = vmul.f32 1.442695, %v767_v11 }
 0x3b9   : > { %v2482_v48 = vpop.eup %1576 }
 0x3ba   : > { %v2484_v33 = vpop.eup %1578  ;;  %1582 = vpow2.f32 %v890_v60  ;;  %v982_v8 = vadd.f32 %v2482_v48, %v2480_v58 }
 0x3bb   : > { %v2488_v54 = vpop.eup %1580  ;;  %1584 = vpow2.f32 %v892_v7 }
 0x3bc   : > { %1586 = vrcp.f32 %v936_v63  ;;  %983 = vadd.xlane.f32.xlu2 %v982_v8  ;;  %v985_v39 = vadd.f32 %v2488_v54, %v2484_v33 }
 0x3bd   : > { %1588 = vrcp.f32 %v939_v51  ;;  %v945_v40 = vpop.xlane.xlu1 %944  ;;  %v942_v49 = vpop.xlane.xlu2 %941 }
 0x3be   : > { %986 = vadd.xlane.f32.xlu1 %v985_v39  ;;  %1590 = vrcp.f32 %v945_v40 }
 0x3bf   : > { %1592 = vrcp.f32 %v942_v49 }
 0x3c0   : > { %v2492_v52 = vpop.eup %1582  ;;  %1594 = vrcp.f32 %v933_v62 }
 0x3c1   : > { %v2494_v43 = vpop.eup %1584  ;;  %1596 = vrcp.f32 %v2450_v29 }
 0x3c2   : > { %v1587_v4 = vpop.eup %1586  ;;  %v988_v28 = vadd.f32 %v2494_v43, %v2492_v52  ;;  %1598 = vrcp.f32 %v2448_v6 }
 0x3c3   : > { %v1589_v63 = vpop.eup %1588  ;;  %1600 = vrcp.f32 %v2432_v55  ;;  %v1039_v8 = vmul.f32 %v1587_v4, %v2298_v27 }
 0x3c4   : > { %v1591_v35 = vpop.eup %1590  ;;  %989 = vadd.xlane.f32.xlu2 %v988_v28  ;;  %v2502_v19 = vmul.f32 %v1589_v63, %v2298_v27 }
 0x3c5   : > { %v1593_v59 = vpop.eup %1592  ;;  %v1042_v21 = vmul.f32 %v1591_v35, %v2298_v27  ;;  %v705_v51 = vpop.xlane.xlu2 %704 }
 0x3c6   : > { %v1041_v62 = vmul.f32 %v1593_v59, %v2298_v27  ;;  %v768_v11 = vsub.f32 %v2292_v18, %v705_v51  ;;  %v769_v60 = vsub.f32 %v2294_v36, %v705_v51  ;;  %v1595_v7 = vpop.eup %1594  ;;  %v1085_v18 = vmul.f32 %v2268_v23, %v2502_v19 }
 0x3c7   : > { %v1089_v29 = vmul.f32 %v2284_v30, %v1042_v21  ;;  %v1597_v49 = vpop.eup %1596  ;;  %v1038_v28 = vmul.f32 %v1595_v7, %v2298_v27  ;;  %v2790_v30 = vld [vmem:[#allocation25_spill] sm:$0xff] }
 0x3c8   : > { %v894_v6 = vmul.f32 1.442695, %v768_v11  ;;  %v896_v39 = vmul.f32 1.442695, %v769_v60  ;;  %v1087_v40 = vmul.f32 %v2280_v20, %v1041_v62  ;;  %v1599_v36 = vpop.eup %1598  ;;  %v1037_v55 = vmul.f32 %v1597_v49, %v2298_v27  ;;  %v2791_v20 = vld [vmem:[#allocation23_spill] sm:$0xff] }
 0x3c9   : > { %v1083_v35 = vmul.f32 %v2790_v30, %v1039_v8  ;;  %v1601_v4 = vpop.eup %1600  ;;  %v1036_v59 = vmul.f32 %v1599_v36, %v2298_v27  ;;  %v1081_v11 = vmul.f32 %v2791_v20, %v1038_v28 }
 0x3ca   : > { %1602 = vpow2.f32 %v894_v6  ;;  %v1137_v63 = vpack.c.bf16 %v1089_v29, %v1087_v40  ;;  %v1035_v7 = vmul.f32 %v1601_v4, %v2298_v27  ;;  %v2792_v29 = vld [vmem:[#allocation21_spill] sm:$0xff] }
 0x3cb   : > { %1604 = vpow2.f32 %v896_v39  ;;  %v1135_v51 = vpack.c.bf16 %v1085_v18, %v1083_v35  ;;  %v1079_v23 = vmul.f32 %v2792_v29, %v1037_v55  ;;  %v2794_v18 = vld [vmem:[#allocation17_spill] sm:$0xff]  ;;  %v2795_v29 = vpack.c.bf16 %v2414_v32, %v2411_v57 }
 0x3cc   : > { %1159 = vmatpush.bf16.msra.mxu0 %v1137_v63  ;;  %v2793_v63 = vld [vmem:[#allocation19_spill] sm:$0xff]  ;;  %v1075_v36 = vmul.f32 %v2794_v18, %v1035_v7  ;;  %v226_v4 = vld [vmem:[%s2734_s2] sm:$0xff] }
 0x3cd   : > { %v1133_v49 = vpack.c.bf16 %v1081_v11, %v1079_v23  ;;  %v1077_v30 = vmul.f32 %v2793_v63, %v1036_v59  ;;  %v229_v63 = vld [vmem:[%s2734_s2 + $0x18] sm:$0xff] }
 0x3cf   : > { %v948_v39 = vpop.xlane.xlu2 %947  ;;  %v1131_v35 = vpack.c.bf16 %v1077_v30, %v1075_v36  ;;  %v2797_v36 = vld [vmem:[#allocation28_spill] sm:$0xff] }
 0x3d0   : > { %v2518_v60 = vpop.eup %1602  ;;  %1160 = vmatpush.bf16.msra.mxu0 %v1135_v51  ;;  %1606 = vrcp.f32 %v948_v39 }
 0x3d1   : > { %v2522_v6 = vpop.eup %1604 }
 0x3d2   : > { %v991_v40 = vadd.f32 %v2522_v6, %v2518_v60 }
 0x3d4   : > { %992 = vadd.xlane.f32.xlu1 %v991_v40  ;;  %1161 = vmatpush.bf16.msra.mxu0 %v1133_v49  ;;  %v2796_v40 = vpack.c.bf16 %v2378_v25, %v2375_v34  ;;  %v1088_v34 = vmul.f32 %v2797_v36, %v1041_v62  ;;  %v2798_v25 = vld [vmem:[#allocation29_spill] sm:$0xff]  ;;  %v2802_v62 = vld [vmem:[#allocation26_spill] sm:$0xff]  ;;  %v2805_v36 = vld [vmem:[#allocation20_spill] sm:$0xff] }
 0x3d6   : > { %v1607_v51 = vpop.eup %1606 }
 0x3d7   : > { %v951_v20 = vpop.xlane.xlu1 %950  ;;  %v1043_v11 = vmul.f32 %v1607_v51, %v2298_v27 }
 0x3d8   : > { %1608 = vrcp.f32 %v951_v20  ;;  %1162 = vmatpush.bf16.msra.mxu0 %v1131_v35  ;;  %v1090_v35 = vmul.f32 %v2798_v25, %v1042_v21  ;;  %v2801_v21 = vpack.c.bf16 %v2310_v17, %v2307_v15 }
 0x3d9   : > { %v2543_v30 = vmul.f32 %v2318_v1, %v1043_v11  ;;  %v2549_v32 = vmul.f32 %v2320_v46, %v1043_v11 }
 0x3dc   : > { %1163 = vmatpush.bf16.msra.mxu0 %v2795_v29  ;;  %241 = vperm.xlu2 %1444, %v226_v4   ;;  %v1138_v4 = vpack.c.bf16 %v1090_v35, %v1088_v34  ;;  %v1084_v29 = vmul.f32 %v2802_v62, %v1039_v8  ;;  %v1078_v8 = vmul.f32 %v2805_v36, %v1036_v59  ;;  %v2806_v34 = vld [vmem:[#allocation18_spill] sm:$0xff] }
 0x3dd   : > { %v1076_v25 = vmul.f32 %v2806_v34, %v1035_v7 }
 0x3de   : > { %v1609_v23 = vpop.eup %1608 }
 0x3df   : > { %v1044_v39 = vmul.f32 %v1609_v23, %v2298_v27  ;;  %v954_v49 = vpop.xlane.xlu2 %953  ;;  %v2803_v23 = vld [vmem:[#allocation24_spill] sm:$0xff] }
 0x3e0   : > { %1164 = vmatpush.bf16.msra.mxu0 %v2796_v40  ;;  %1610 = vrcp.f32 %v954_v49 }
 0x3e1   : > { %v2546_v57 = vmul.f32 %v2330_v26, %v1044_v39  ;;  %v2552_v18 = vmul.f32 %v2332_v37, %v1044_v39  ;;  %v2799_v26 = vpack.c.bf16 %v2344_v44, %v2341_v14  ;;  %v2800_v37 = vld [vmem:[#allocation27_spill] sm:$0xff]  ;;  %v227_v14 = vld [vmem:[%s2734_s2 + $0x8] sm:$0xff]  ;;  %v1082_v39 = vmul.f32 %v2803_v23, %v1038_v28 }
 0x3e2   : > { %v1086_v51 = vmul.f32 %v2800_v37, %v2502_v19  ;;  %v2804_v19 = vld [vmem:[#allocation22_spill] sm:$0xff] }
 0x3e3   : > { %v1139_v20 = vpack.c.bf16 %v2546_v57, %v2543_v30  ;;  %v1140_v1 = vpack.c.bf16 %v2552_v18, %v2549_v32  ;;  %v1080_v49 = vmul.f32 %v2804_v19, %v1037_v55  ;;  %v1639_v32 = vld [vmem:[%s1869_s11 + $0x10] sm:$0xff] }
 0x3e4   : > { %1165 = vmatpush.bf16.msra.mxu0 %v2799_v26  ;;  %256 = vperm.xlu2 %1444, %v229_v63   ;;  %v1136_v44 = vpack.c.bf16 %v1086_v51, %v1084_v29 }
 0x3e5   : > { %v1134_v17 = vpack.c.bf16 %v1082_v39, %v1080_v49 }
 0x3e6   : > { %v1611_v11 = vpop.eup %1610 }
 0x3e7   : > { %v957_v46 = vpop.xlane.xlu1 %956  ;;  %v1045_v40 = vmul.f32 %v1611_v11, %v2298_v27 }
 0x3e8   : > { %1612 = vrcp.f32 %v957_v46  ;;  %1166 = vmatpush.bf16.msra.mxu0 %v2801_v21  ;;  %v1132_v46 = vpack.c.bf16 %v1078_v8, %v1076_v25 }
 0x3e9   : > { %v2579_v35 = vmul.f32 %v2352_v45, %v1045_v40  ;;  %v2585_v26 = vmul.f32 %v2354_v2, %v1045_v40  ;;  %v2807_v45 = vpack.c.bf16 %v2420_v22, %v2417_v53  ;;  %v2809_v2 = vpack.c.bf16 %v2350_v47, %v2347_v3 }
 0x3ec   : > { %1197 = vmatpush.bf16.msrb.mxu0 %v1138_v4 }
 0x3ed   : > { %246 = vperm.xlu1 %1445, %v227_v14  }
 0x3ee   : > { %v1613_v63 = vpop.eup %1612 }
 0x3ef   : > { %v1046_v15 = vmul.f32 %v1613_v63, %v2298_v27  ;;  %v960_v7 = vpop.xlane.xlu2 %959 }
 0x3f0   : > { %1198 = vmatpush.bf16.msrb.mxu0 %v1136_v44 }
 0x3f1   : > { %v2582_v28 = vmul.f32 %v2364_v50, %v1046_v15  ;;  %v2588_v55 = vmul.f32 %v2366_v13, %v1046_v15  ;;  %v2808_v50 = vpack.c.bf16 %v2384_v24, %v2381_v9  ;;  %v2810_v13 = vpack.c.bf16 %v2316_v12, %v2313_v31 }
 0x3f3   : > { %v1141_v4 = vpack.c.bf16 %v2582_v28, %v2579_v35  ;;  %v1142_v59 = vpack.c.bf16 %v2588_v55, %v2585_v26 }
 0x3f4   : > { %1199 = vmatpush.bf16.msrb.mxu0 %v1134_v17 }
 0x3f7   : > { %v963_v37 = vpop.xlane.xlu1 %962 }
 0x3f8   : > { %1200 = vmatpush.bf16.msrb.mxu0 %v1132_v46 }
 0x3fc   : > { %1201 = vmatpush.bf16.msrb.mxu0 %v2807_v45 }
 0x3ff   : > { %v966_v51 = vpop.xlane.xlu2 %965 }
 0x400   : > { %1202 = vmatpush.bf16.msrb.mxu0 %v2808_v50 }
 0x404   : > { %1203 = vmatpush.bf16.msrb.mxu0 %v2809_v2 }
 0x407   : > { %v969_v21 = vpop.xlane.xlu1 %968 }
 0x408   : > { %1204 = vmatpush.bf16.msrb.mxu0 %v2810_v13 }
 0x409   : > { %v972_v62 = vpop.xlane.xlu2 %971 }
 0x40f   : > { %v975_v29 = vpop.xlane.xlu1 %974 }
 0x41f   : > { %v978_v53 = vpop.xlane.xlu2 %977 }
 0x421   : > { %v981_v22 = vpop.xlane.xlu1 %980 }
 0x42f   : > { %v984_v11 = vpop.xlane.xlu2 %983 }
 0x431   : > { %v987_v14 = vpop.xlane.xlu1 %986 }
 0x437   : > { %v990_v9 = vpop.xlane.xlu2 %989 }
 0x438   : > { %1614 = vrcp.f32 %v990_v9  ;;  %v2811_v9 = vld [vmem:[#allocation9_spill] sm:$0xff] }
 0x439   : > { %1616 = vrcp.f32 %v984_v11 }
 0x43a   : > { %1618 = vrcp.f32 %v987_v14 }
 0x43e   : > { %v1615_v47 = vpop.eup %1614 }
 0x43f   : > { %v1617_v31 = vpop.eup %1616  ;;  %v2607_v24 = vmul.f32 %v1615_v47, %v2298_v27  ;;  %v2812_v47 = vld [vmem:[#allocation11_spill] sm:$0xff] }
 0x440   : > { %v1619_v12 = vpop.eup %1618  ;;  %v1055_v40 = vmul.f32 %v1617_v31, %v2298_v27 }
 0x441   : > { %v2610_v39 = vmul.f32 %v1619_v12, %v2298_v27  ;;  %v1119_v63 = vmul.f32 %v2492_v52, %v2607_v24 }
 0x442   : > { %v1115_v34 = vmul.f32 %v2480_v58, %v1055_v40 }
 0x443   : > { %v1117_v25 = vmul.f32 %v2484_v33, %v2610_v39 }
 0x447   : > { %v993_v3 = vpop.xlane.xlu1 %992 }
 0x448   : > { %1620 = vrcp.f32 %v993_v3 }
 0x449   : > { %1622 = vrcp.f32 %v978_v53  ;;  %v242_v53 = vpop.permute.xlu2 %241 }
 0x44a   : > { %1624 = vrcp.f32 %v981_v22  ;;  %v298_v3 = vadd.f32 %v2811_v9, %v242_v53 }
 0x44b   : > { %1626 = vrcp.f32 %v975_v29 }
 0x44c   : > { %1628 = vrcp.f32 %v972_v62 }
 0x44d   : > { %1630 = vrcp.f32 %v969_v21 }
 0x44e   : > { %v1621_v44 = vpop.eup %1620  ;;  %1632 = vrcp.f32 %v966_v51 }
 0x44f   : > { %v1623_v23 = vpop.eup %1622  ;;  %v1058_v19 = vmul.f32 %v1621_v44, %v2298_v27  ;;  %1634 = vrcp.f32 %v963_v37 }
 0x450   : > { %v1625_v49 = vpop.eup %1624  ;;  %v2618_v17 = vmul.f32 %v1623_v23, %v2298_v27  ;;  %1636 = vrcp.f32 %v960_v7 }
 0x451   : > { %v1121_v15 = vmul.f32 %v2518_v60, %v1058_v19  ;;  %v2621_v36 = vmul.f32 %v1625_v49, %v2298_v27  ;;  %v1627_v46 = vpop.eup %1626  ;;  %v1151_v60 = vpack.c.bf16 %v1117_v25, %v1115_v34  ;;  %v2814_v34 = vld [vmem:[#allocation12_spill] sm:$0xff] }
 0x452   : > { %v1629_v45 = vpop.eup %1628  ;;  %v1052_v52 = vmul.f32 %v1627_v46, %v2298_v27  ;;  %v1111_v50 = vmul.f32 %v2462_v38, %v2618_v17  ;;  %v2815_v46 = vld [vmem:[#allocation13_spill] sm:$0xff] }
 0x453   : > { %v1153_v8 = vpack.c.bf16 %v1121_v15, %v1119_v63  ;;  %v1113_v2 = vmul.f32 %v2466_v16, %v2621_v36  ;;  %v1631_v13 = vpop.eup %1630  ;;  %v1051_v58 = vmul.f32 %v1629_v45, %v2298_v27  ;;  %v252_v15 = vpop.permute.xlu0 %251 }
 0x454   : > { %v1633_v33 = vpop.eup %1632  ;;  %v1050_v51 = vmul.f32 %v1631_v13, %v2298_v27  ;;  %v1109_v37 = vmul.f32 %v2452_v0, %v1052_v52  ;;  %v304_v45 = vadd.f32 %v2815_v46, %v252_v15 }
 0x455   : > { %1178 = vmatpush.bf16.msra.mxu1 %v1153_v8  ;;  %v1149_v21 = vpack.c.bf16 %v1113_v2, %v1111_v50  ;;  %v1635_v62 = vpop.eup %1634  ;;  %v1049_v29 = vmul.f32 %v1633_v33, %v2298_v27  ;;  %v1107_v38 = vmul.f32 %v2440_v56, %v1051_v58  ;;  %v1122_v8 = vmul.f32 %v2522_v6, %v1058_v19  ;;  %v2821_v33 = vld [vmem:[#allocation16_spill] sm:$0xff] }
 0x456   : > { %v1637_v22 = vpop.eup %1636  ;;  %v1048_v16 = vmul.f32 %v1635_v62, %v2298_v27  ;;  %v1105_v14 = vmul.f32 %v2436_v61, %v1050_v51  ;;  %v257_v61 = vpop.permute.xlu2 %256  ;;  %v1116_v2 = vmul.f32 %v2482_v48, %v1055_v40  ;;  %v1118_v6 = vmul.f32 %v2488_v54, %v2610_v39  ;;  %v2818_v40 = vld [vmem:[#allocation35_spill] sm:$0xff]  ;;  %v2819_v39 = vld [vmem:[#allocation34_spill] sm:$0xff] }
 0x457   : > { %v1147_v11 = vpack.c.bf16 %v1109_v37, %v1107_v38  ;;  %v1047_v0 = vmul.f32 %v1637_v22, %v2298_v27  ;;  %v1103_v12 = vmul.f32 %v2422_v5, %v1049_v29  ;;  %v2813_v27 = vld [vmem:[#allocation15_spill] sm:$0xff]  ;;  %v1110_v54 = vmul.f32 %v2818_v40, %v1052_v52  ;;  %v2822_v37 = vld [vmem:[#allocation32_spill] sm:$0xff]  ;;  %v2825_v52 = vld [vmem:[#allocation30_spill] sm:$0xff] }
 0x458   : > { %v1101_v56 = vmul.f32 %v2398_v41, %v1048_v16  ;;  %v307_v5 = vadd.f32 %v2813_v27, %v257_v61  ;;  %v1120_v41 = vmul.f32 %v2494_v43, %v2607_v24  ;;  %v1152_v43 = vpack.c.bf16 %v1118_v6, %v1116_v2  ;;  %v2817_v24 = vld [vmem:[#allocation36_spill] sm:$0xff]  ;;  %v2824_v38 = vld [vmem:[#allocation31_spill] sm:$0xff] }
 0x459   : > { %1179 = vmatpush.bf16.msra.mxu1 %v1151_v60  ;;  %v1145_v23 = vpack.c.bf16 %v1105_v14, %v1103_v12  ;;  %v1099_v49 = vmul.f32 %v2386_v10, %v1047_v0  ;;  %v2816_v10 = vld [vmem:[#allocation10_spill] sm:$0xff]  ;;  %v1114_v19 = vmul.f32 %v2817_v24, %v2621_v36  ;;  %v1108_v30 = vmul.f32 %v2819_v39, %v1051_v58  ;;  %v1645_v6 = vld [vmem:[%s1869_s11 + $0x38] sm:$0xff] }
 0x45a   : > { %v330_v60 = vadd.f32 %v2816_v10, %v242_v53  ;;  %v1154_v50 = vpack.c.bf16 %v1122_v8, %v1120_v41  ;;  %v1157_v28 = vpack.c.bf16 %v307_v5, %v304_v45  ;;  %v1104_v62 = vmul.f32 %v2822_v37, %v1049_v29  ;;  %v2823_v53 = vld [vmem:[#allocation14_spill] sm:$0xff]  ;;  %v1643_v5 = vld [vmem:[%s1869_s11 + $0x18] sm:$0xff] }
 0x45b   : > { %v1143_v63 = vpack.c.bf16 %v1101_v56, %v1099_v49  ;;  %v1148_v57 = vpack.c.bf16 %v1110_v54, %v1108_v30  ;;  %v1102_v36 = vmul.f32 %v2824_v38, %v1048_v16  ;;  %v1638_v16 = vld [vmem:[%s1869_s11] sm:$0xff]  ;;  %v1644_v45 = vld [vmem:[%s1869_s11 + $0x28] sm:$0xff] }
 0x45d   : > { %1180 = vmatpush.bf16.msra.mxu1 %v1149_v21  ;;  %v339_v21 = vadd.f32 %v2821_v33, %v257_v61 }
 0x45f   : > { %v247_v7 = vpop.permute.xlu1 %246 }
 0x460   : > { %v301_v31 = vadd.f32 %v2812_v47, %v247_v7  ;;  %v333_v25 = vadd.f32 %v2814_v34, %v247_v7  ;;  %v1100_v7 = vmul.f32 %v2825_v52, %v1047_v0 }
 0x461   : > { %1181 = vmatpush.bf16.msra.mxu1 %v1147_v11 }
 0x462   : > { %v1155_v44 = vpack.c.bf16 %v301_v31, %v298_v3  ;;  %v1156_v35 = vpack.c.bf16 %v333_v25, %v330_v60  ;;  %v1144_v58 = vpack.c.bf16 %v1102_v36, %v1100_v7 }
 0x464   : > { %1167 = vmatmul.bf16.vlgmr.msra.gmra.mxu0 %v1155_v44 }
 0x465   : > { %1182 = vmatpush.bf16.msra.mxu1 %v1145_v23 }
 0x469   : > { %1183 = vmatpush.bf16.msra.mxu1 %v1143_v63  ;;  %v1642_v63 = vld [vmem:[%s1869_s11 + $0x8] sm:$0xff] }
 0x46d   : > { %1184 = vmatpush.bf16.msra.mxu1 %v1141_v4  ;;  %v1112_v4 = vmul.f32 %v2464_v42, %v2618_v17  ;;  %v336_v42 = vadd.f32 %v2823_v53, %v252_v15 }
 0x46f   : > { %v1150_v48 = vpack.c.bf16 %v1114_v19, %v1112_v4  ;;  %v1158_v22 = vpack.c.bf16 %v339_v21, %v336_v42 }
 0x471   : > { %1185 = vmatpush.bf16.msra.mxu1 %v1139_v20  ;;  %v2820_v20 = vld [vmem:[#allocation33_spill] sm:$0xff] }
 0x472   : > { %v1106_v13 = vmul.f32 %v2820_v20, %v1050_v51 }
 0x474   : > { %1172 = vmatmul.bf16.gmra.mxu0 %v1157_v28  ;;  %1186 = vmatmul.bf16.vlgmr.msra.gmra.mxu1 %v1156_v35  ;;  %v1146_v17 = vpack.c.bf16 %v1106_v13, %v1104_v62 }
 0x475   : > { %1216 = vmatpush.bf16.msrb.mxu1 %v1154_v50 }
 0x479   : > { %1217 = vmatpush.bf16.msrb.mxu1 %v1152_v43 }
 0x47d   : > { %1218 = vmatpush.bf16.msrb.mxu1 %v1150_v48 }
 0x481   : > { %1219 = vmatpush.bf16.msrb.mxu1 %v1148_v57 }
 0x484   : > { %1191 = vmatmul.bf16.gmra.mxu1 %v1158_v22  ;;  %1205 = vmatmul.bf16.vlgmr.msrb.gmra.mxu0 %v1155_v44  ;;  %v1641_v44 = vld [vmem:[%s1869_s11 + $0x30] sm:$0xff] }
 0x485   : > { %1220 = vmatpush.bf16.msrb.mxu1 %v1146_v17 }
 0x489   : > { %1221 = vmatpush.bf16.msrb.mxu1 %v1144_v58 }
 0x48d   : > { %1222 = vmatpush.bf16.msrb.mxu1 %v1142_v59  ;;  %v1640_v59 = vld [vmem:[%s1869_s11 + $0x20] sm:$0xff] }
 0x491   : > { %1223 = vmatpush.bf16.msrb.mxu1 %v1140_v1 }
 0x494   : > { %1210 = vmatmul.bf16.gmra.mxu0 %v1157_v28  ;;  %1224 = vmatmul.bf16.vlgmr.msrb.gmra.mxu1 %v1156_v35 }
 0x4a4   : > { %1229 = vmatmul.bf16.gmra.mxu1 %v1158_v22 }
 0x4e1   : > { %v1168_v51 = vpop.f32.mrf.mxu0 }
 0x4e2   : > { %v1169_v11 = vadd.f32 %v1638_v16, %v1168_v51 }
 0x4e9   : > { %v1170_v29 = vpop.f32.mrf.mxu0 }
 0x4ea   : > { %v1171_v18 = vadd.f32 %v1639_v32, %v1170_v29 }
 0x4f1   : > { %v1187_v14 = vpop.f32.mrf.mxu1  ;;  %v1173_v3 = vpop.f32.mrf.mxu0 }
 0x4f2   : > { %v1188_v9 = vadd.f32 %v1187_v14, %v1169_v11  ;;  %v1174_v47 = vadd.f32 %v1640_v59, %v1173_v3 }
 0x4f4   : > { %1235 = vst [vmem:[%s2681_s16] sm:$0xff] %v1188_v9 }
 0x4f9   : > { %v1189_v1 = vpop.f32.mrf.mxu1  ;;  %v1175_v55 = vpop.f32.mrf.mxu0 }
 0x4fa   : > { %v1190_v26 = vadd.f32 %v1189_v1, %v1171_v18  ;;  %v1176_v23 = vadd.f32 %v1641_v44, %v1175_v55 }
 0x4fc   : > { %1237 = vst [vmem:[%s2681_s16 + $0x10] sm:$0xff] %v1190_v26 }
 0x501   : > { %v1192_v31 = vpop.f32.mrf.mxu1  ;;  %v1206_v12 = vpop.f32.mrf.mxu0 }
 0x502   : > { %v1193_v0 = vadd.f32 %v1192_v31, %v1174_v47  ;;  %v1207_v61 = vadd.f32 %v1642_v63, %v1206_v12 }
 0x504   : > { %1239 = vst [vmem:[%s2681_s16 + $0x20] sm:$0xff] %v1193_v0 }
 0x509   : > { %v1194_v56 = vpop.f32.mrf.mxu1  ;;  %v1208_v15 = vpop.f32.mrf.mxu0 }
 0x50a   : > { %v1195_v49 = vadd.f32 %v1194_v56, %v1176_v23  ;;  %v1209_v34 = vadd.f32 %v1643_v5, %v1208_v15 }
 0x50c   : > { %1241 = vst [vmem:[%s2681_s16 + $0x30] sm:$0xff] %v1195_v49 }
 0x511   : > { %v1225_v8 = vpop.f32.mrf.mxu1  ;;  %v1211_v46 = vpop.f32.mrf.mxu0 }
 0x512   : > { %v1226_v27 = vadd.f32 %v1225_v8, %v1207_v61  ;;  %v1212_v10 = vadd.f32 %v1644_v45, %v1211_v46 }
 0x514   : > { %1236 = vst [vmem:[%s2681_s16 + $0x8] sm:$0xff] %v1226_v27 }
 0x519   : > { %v1227_v25 = vpop.f32.mrf.mxu1  ;;  %v1213_v2 = vpop.f32.mrf.mxu0 }
 0x51a   : > { %v1228_v41 = vadd.f32 %v1227_v25, %v1209_v34  ;;  %v1214_v35 = vadd.f32 %v1645_v6, %v1213_v2 }
 0x51c   : > { %1238 = vst [vmem:[%s2681_s16 + $0x18] sm:$0xff] %v1228_v41 }
 0x521   : > { %v1230_v60 = vpop.f32.mrf.mxu1 }
 0x522   : > { %v1231_v50 = vadd.f32 %v1230_v60, %v1212_v10 }
 0x524   : > { %1240 = vst [vmem:[%s2681_s16 + $0x28] sm:$0xff] %v1231_v50 }
 0x529   : > { %v1232_v28 = vpop.f32.mrf.mxu1 }
 0x52a   : > { %v1233_v43 = vadd.f32 %v1232_v28, %v1214_v35 }
 0x52c   : > { %1242 = vst [vmem:[%s2681_s16 + $0x38] sm:$0xff] %v1233_v43 }
 0x52d   : > { %1703 = shalt.err (!%p1700_p4)
}
 0x52e   : > { %s1747_s7 = smov 256   ;;  %s1748_s11 = smov 16  }
 0x52f   : > { %1394 = dma.vmem_to_hbm [thread:$0]  (%p1827_p11), %s1257_s26, 1024, %s1259_s5, %s1244_s30, %s1747_s7, %s1747_s7, %s1748_s11  }
 0x530 PF: > { %s1273_s14 = sand.u32 1, %s1730_s17   ;;  %p2826_p7 = scmp.ge.s32.totalorder %s1742_s20, 2 }
 0x531   : > { %s1274_s15 = scalar_lea.sflag [#allocation5], %s1273_s14 }
 0x532   : > { %p1401_p5 = pnand %p2826_p7, %p1831_p12 }
 0x534   : > { %p1402_p8 = pneg %p1401_p5 }
 0x536   : > { %1725 = dma.done.wait (%p1402_p8), %s1274_s15, 1024  }
 0x537   : > { %1727 = vsyncadd (%p1402_p8), %s1274_s15, 4294966272  ;;  %p18_p10 = scmp.ge.s32.totalorder %s1802_s22, 4   ;;  %s2827_s17 = smov %s1734_s18 }
 0x538   : > { %s2828_s18 = smov %s1738_s19  ;;  %s2829_s19 = smov %s1814_s25 }
 0x539   : > { %s2830_s20 = smov %s1802_s22  ;;  %20 = sbr.rel (!%p18_p10) target bundleno = 7 (0x7), region = 81 }
 0x53e   :  { %1280 = vsyncpa [#allocation4], 1 }
 0x53f   :  { %1282 = vsyncpa [#allocation4 + $0x1], 1 }
 0x540   :  { %1283 = vsyncpa [#allocation5], 1 }
 0x541   :  { %1285 = vsyncpa [#allocation5 + $0x1], 1 }

</bundles_post_ra>
